<compile_context>
chip_gen: v5e
topology: v5e:2x2
jax: 0.10.0
libtpu: 0.0.40
codegen_flags: <defaults>
</compile_context>

<pallas_src>
import jax
import jax.numpy as jnp
import numpy as np
from jax.experimental import pallas as pl
from jax.experimental.pallas import tpu as pltpu

HIDDEN = 256
INPUT = 4
NUM_CLASSES = 3
NUM_LAYERS = 3
NC_PAD = 128            # lane-dense padded FC output width
GATES = 3               # packed live gates shipped to the kernel: (i, g, o); f is dead
GW = GATES * HIDDEN     # 768


def _gates_to_h(gates, H):
    # Packed gate order (i, g, o).  With seq_len == 1 and zero initial state,
    # c_prev == 0, so the forget gate never contributes: c = i * g, h = o * tanh(c).
    i = jax.nn.sigmoid(gates[:, 0:H])
    g = jnp.tanh(gates[:, H:2 * H])
    o = jax.nn.sigmoid(gates[:, 2 * H:3 * H])
    return o * jnp.tanh(i * g)


def lstm_kernel(x_ref, small_ref, wstk_ref, wfc_ref, out_ref):
    H = HIDDEN
    x = x_ref[...]                                   # (B, 4) f32

    # Coalesced small f32 slab (8, 768):
    #   rows 0..3 : layer-0 weight (input->gates), packed (i,g,o)
    #   rows 4..6 : per-layer gate bias (b_ih + b_hh), packed (i,g,o)
    #   row  7    : FC bias padded into lanes 0..127 (zeros elsewhere)
    wih0 = small_ref[0:INPUT, :]                     # (4, 768) f32
    b0 = small_ref[INPUT + 0:INPUT + 1, :]           # (1, 768)
    b1 = small_ref[INPUT + 1:INPUT + 2, :]
    b2 = small_ref[INPUT + 2:INPUT + 3, :]
    bfc = small_ref[INPUT + 3:INPUT + 4, :NC_PAD]    # (1, 128)

    # ----- layer 0: tiny f32 weight (4 x 768) -------------------------------
    g0 = jnp.dot(x, wih0, preferred_element_type=jnp.float32) + b0
    h = _gates_to_h(g0, H)

    # ----- layers 1 & 2: bf16 weights / activations into MXU, f32 accumulate
    g1 = (jnp.dot(h.astype(jnp.bfloat16), wstk_ref[0],
                  preferred_element_type=jnp.float32) + b1)
    h = _gates_to_h(g1, H)

    g2 = (jnp.dot(h.astype(jnp.bfloat16), wstk_ref[1],
                  preferred_element_type=jnp.float32) + b2)
    h = _gates_to_h(g2, H)

    # ----- FC head: bf16 weight, lane-dense padded output (B, 128) ----------
    out_ref[...] = (jnp.dot(h.astype(jnp.bfloat16), wfc_ref[...],
                            preferred_element_type=jnp.float32) + bfc)


def lstm_forward(x, kernel_params):
    # GUARD: the dropped w_hh / c_prev / forget-gate terms are valid ONLY because
    # the original module runs the LSTM on seq_len == 1 (x.unsqueeze(1)) with the
    # default zero initial (h0, c0).  Do not reuse for seq_len > 1 / nonzero state.
    assert x.ndim == 2 and x.shape[1] == INPUT, (
        "lstm_forward expects (B, input_size) exactly as the PyTorch module's forward")
    B = x.shape[0]
    vmem = pl.BlockSpec(memory_space=pltpu.MemorySpace.VMEM)
    out = pl.pallas_call(
        lstm_kernel,
        out_shape=jax.ShapeDtypeStruct((B, NC_PAD), jnp.float32),
        in_specs=[vmem] * (1 + len(kernel_params)),
        out_specs=vmem,
    )(x, *kernel_params)
    return out[:, :NUM_CLASSES]


def init_raw_params(key):
    """PyTorch-shaped parameters; uniform(-1/sqrt(H), 1/sqrt(H)) like nn.LSTM/Linear."""
    k = 1.0 / np.sqrt(HIDDEN)
    keys = jax.random.split(key, 4 * NUM_LAYERS + 2)
    raw = {}
    ki = 0
    for layer in range(NUM_LAYERS):
        in_feat = INPUT if layer == 0 else HIDDEN
        raw[f"w_ih{layer}"] = jax.random.uniform(keys[ki], (4 * HIDDEN, in_feat), jnp.float32, -k, k); ki += 1
        # w_hh exists in the PyTorch module but multiplies a zero h_prev -> never shipped.
        raw[f"w_hh{layer}"] = jax.random.uniform(keys[ki], (4 * HIDDEN, HIDDEN), jnp.float32, -k, k); ki += 1
        raw[f"b_ih{layer}"] = jax.random.uniform(keys[ki], (4 * HIDDEN,), jnp.float32, -k, k); ki += 1
        raw[f"b_hh{layer}"] = jax.random.uniform(keys[ki], (4 * HIDDEN,), jnp.float32, -k, k); ki += 1
    raw["w_fc"] = jax.random.uniform(keys[ki], (NUM_CLASSES, HIDDEN), jnp.float32, -k, k); ki += 1
    raw["b_fc"] = jax.random.uniform(keys[ki], (NUM_CLASSES,), jnp.float32, -k, k); ki += 1
    return raw


def _pack_igo(w):
    """Keep only the live gate rows (i, g, o) from PyTorch's (i, f, g, o) layout.
    Works for 1-D biases (4H,) and 2-D weights (4H, in)."""
    H = HIDDEN
    return jnp.concatenate([w[0:H], w[2 * H:3 * H], w[3 * H:4 * H]], axis=0)


def prepare_kernel_params(raw):
    """Transpose / pack / cast / coalesce parameters for the kernel (pure glue)."""
    # layer-0 weight, live gates only, transposed: (4, 768) f32
    w_ih0_t = _pack_igo(raw["w_ih0"]).T
    # layers 1/2 stacked, live gates only: (2, 256, 768) bf16 (the dominant DMA)
    w_stack = jnp.stack([_pack_igo(raw["w_ih1"]).T,
                         _pack_igo(raw["w_ih2"]).T]).astype(jnp.bfloat16)
    # per-layer gate biases (b_ih + b_hh), live gates only: (768,) each
    b_rows = [_pack_igo(raw[f"b_ih{l}"] + raw[f"b_hh{l}"]) for l in range(NUM_LAYERS)]
    # FC bias padded into lanes 0..127 of a 768-wide row (zeros elsewhere)
    b_fc_row = jnp.zeros((GW,), jnp.float32).at[:NUM_CLASSES].set(raw["b_fc"])
    # coalesced small f32 slab: (8, 768)
    small = jnp.concatenate([w_ih0_t, jnp.stack(b_rows + [b_fc_row])], axis=0)
    # FC weight zero-padded to 128 output lanes, bf16: (256, 128)
    # (columns 3..127 must stay exactly zero -- the wrapper slices [:, :3])
    w_fc_pad = (jnp.zeros((HIDDEN, NC_PAD), jnp.float32)
                .at[:, :NUM_CLASSES].set(raw["w_fc"].T)).astype(jnp.bfloat16)
    return (small, w_stack, w_fc_pad)


def reference_f32(x, raw):
    """Pure-JAX f32 reference of the original PyTorch math (incl. the zero w_hh terms)."""
    H = HIDDEN
    B = x.shape[0]
    h = x.astype(jnp.float32)
    for layer in range(NUM_LAYERS):
        h_prev = jnp.zeros((B, H), jnp.float32)
        c_prev = jnp.zeros((B, H), jnp.float32)
        gates = (h @ raw[f"w_ih{layer}"].T + h_prev @ raw[f"w_hh{layer}"].T
                 + raw[f"b_ih{layer}"] + raw[f"b_hh{layer}"])
        i = jax.nn.sigmoid(gates[:, 0 * H:1 * H])
        f = jax.nn.sigmoid(gates[:, 1 * H:2 * H])
        g = jnp.tanh(gates[:, 2 * H:3 * H])
        o = jax.nn.sigmoid(gates[:, 3 * H:4 * H])
        c = f * c_prev + i * g
        h = o * jnp.tanh(c)
    return h @ raw["w_fc"].T + raw["b_fc"]


def reference_bf16(x, raw):
    """Pure-JAX reference replicating the kernel's bf16 weight/activation casts."""
    H = HIDDEN
    h = x.astype(jnp.float32)
    for layer in range(NUM_LAYERS):
        bias = raw[f"b_ih{layer}"] + raw[f"b_hh{layer}"]
        if layer == 0:
            gates = jnp.dot(h, raw["w_ih0"].T, preferred_element_type=jnp.float32) + bias
        else:
            gates = jnp.dot(h.astype(jnp.bfloat16),
                            raw[f"w_ih{layer}"].T.astype(jnp.bfloat16),
                            preferred_element_type=jnp.float32) + bias
        i = jax.nn.sigmoid(gates[:, 0 * H:1 * H])
        g = jnp.tanh(gates[:, 2 * H:3 * H])
        o = jax.nn.sigmoid(gates[:, 3 * H:4 * H])
        h = o * jnp.tanh(i * g)
    return (jnp.dot(h.astype(jnp.bfloat16), raw["w_fc"].T.astype(jnp.bfloat16),
                    preferred_element_type=jnp.float32) + raw["b_fc"])


if __name__ == "__main__":
    key = jax.random.PRNGKey(0)
    k_x, k_p = jax.random.split(key)

    B = 8
    x = jax.random.normal(k_x, (B, INPUT), jnp.float32)
    raw = init_raw_params(k_p)
    kernel_params = prepare_kernel_params(raw)

    out = jax.block_until_ready(lstm_forward(x, kernel_params))
    assert out.shape == (B, NUM_CLASSES)

    # Tight check against a reference replicating the kernel's bf16 casts.
    ref_b = jax.block_until_ready(reference_bf16(x, raw))
    np.testing.assert_allclose(np.asarray(out), np.asarray(ref_b), rtol=2e-4, atol=2e-4)

    # Looser sanity check against the full-f32 PyTorch-equivalent math
    # (bf16 weight casts introduce ~1e-3 level differences).
    ref_f = jax.block_until_ready(reference_f32(x, raw))
    np.testing.assert_allclose(np.asarray(out), np.asarray(ref_f), rtol=1e-2, atol=1e-2)

    print("KERNEL_OK")
</pallas_src>

<mosaic_0001>
module attributes {stable_mosaic.version = 11 : i64} {
  func.func @lstm_kernel(%arg0: memref<8x4xf32, #tpu.memory_space<vmem>>, %arg1: memref<8x768xf32, #tpu.memory_space<vmem>>, %arg2: memref<2x256x768xbf16, #tpu.memory_space<vmem>>, %arg3: memref<256x128xbf16, #tpu.memory_space<vmem>>, %arg4: memref<8x128xf32, #tpu.memory_space<vmem>>) attributes {dimension_semantics = [], scalar_prefetch = 0 : i64, scratch_operands = 0 : i64, tpu.core_type = #tpu.core_type<tc>} {
    %c0 = arith.constant 0 : index
    %c0_0 = arith.constant 0 : index
    %0 = vector.load %arg0[%c0, %c0_0] : memref<8x4xf32, #tpu.memory_space<vmem>>, vector<8x4xf32>
    %c0_1 = arith.constant 0 : index
    %c0_2 = arith.constant 0 : index
    %1 = vector.load %arg1[%c0_1, %c0_2] : memref<8x768xf32, #tpu.memory_space<vmem>>, vector<4x768xf32>
    %c4 = arith.constant 4 : index
    %c0_3 = arith.constant 0 : index
    %2 = vector.load %arg1[%c4, %c0_3] : memref<8x768xf32, #tpu.memory_space<vmem>>, vector<1x768xf32>
    %c5 = arith.constant 5 : index
    %c0_4 = arith.constant 0 : index
    %3 = vector.load %arg1[%c5, %c0_4] : memref<8x768xf32, #tpu.memory_space<vmem>>, vector<1x768xf32>
    %c6 = arith.constant 6 : index
    %c0_5 = arith.constant 0 : index
    %4 = vector.load %arg1[%c6, %c0_5] : memref<8x768xf32, #tpu.memory_space<vmem>>, vector<1x768xf32>
    %c7 = arith.constant 7 : index
    %c0_6 = arith.constant 0 : index
    %5 = vector.load %arg1[%c7, %c0_6] : memref<8x768xf32, #tpu.memory_space<vmem>>, vector<1x128xf32>
    %cst = arith.constant dense<0.000000e+00> : vector<8x768xf32>
    %6 = tpu.matmul %0, %1, %cst {dimension_numbers = #tpu.dot_dimension_numbers<[1], [0], [0], [1], [0, 0, 1, 1], [], []>} : vector<8x4xf32>, vector<4x768xf32>, vector<8x768xf32> -> vector<8x768xf32>
    %7 = vector.broadcast %2 : vector<1x768xf32> to vector<8x768xf32>
    %8 = arith.addf %6, %7 : vector<8x768xf32>
    %9 = vector.extract_strided_slice %8 {offsets = [0, 0], sizes = [8, 256], strides = [1, 1]} : vector<8x768xf32> to vector<8x256xf32>
    %10 = arith.negf %9 : vector<8x256xf32>
    %11 = math.exp %10 : vector<8x256xf32>
    %cst_7 = arith.constant 1.000000e+00 : f32
    %12 = vector.broadcast %cst_7 : f32 to vector<8x256xf32>
    %13 = arith.addf %12, %11 : vector<8x256xf32>
    %14 = arith.divf %12, %13 : vector<8x256xf32>
    %15 = vector.extract_strided_slice %8 {offsets = [0, 256], sizes = [8, 256], strides = [1, 1]} : vector<8x768xf32> to vector<8x256xf32>
    %16 = math.tanh %15 : vector<8x256xf32>
    %17 = vector.extract_strided_slice %8 {offsets = [0, 512], sizes = [8, 256], strides = [1, 1]} : vector<8x768xf32> to vector<8x256xf32>
    %18 = arith.negf %17 : vector<8x256xf32>
    %19 = math.exp %18 : vector<8x256xf32>
    %cst_8 = arith.constant 1.000000e+00 : f32
    %20 = vector.broadcast %cst_8 : f32 to vector<8x256xf32>
    %21 = arith.addf %20, %19 : vector<8x256xf32>
    %22 = arith.divf %20, %21 : vector<8x256xf32>
    %23 = arith.mulf %14, %16 : vector<8x256xf32>
    %24 = math.tanh %23 : vector<8x256xf32>
    %25 = arith.mulf %22, %24 : vector<8x256xf32>
    %26 = arith.truncf %25 : vector<8x256xf32> to vector<8x256xbf16>
    %c0_9 = arith.constant 0 : index
    %c0_10 = arith.constant 0 : index
    %c0_11 = arith.constant 0 : index
    %27 = vector.load %arg2[%c0_9, %c0_10, %c0_11] : memref<2x256x768xbf16, #tpu.memory_space<vmem>>, vector<1x256x768xbf16>
    %28 = vector.shape_cast %27 : vector<1x256x768xbf16> to vector<256x768xbf16>
    %cst_12 = arith.constant dense<0.000000e+00> : vector<8x768xf32>
    %29 = tpu.matmul %26, %28, %cst_12 {dimension_numbers = #tpu.dot_dimension_numbers<[1], [0], [0], [1], [0, 0, 1, 1], [], []>} : vector<8x256xbf16>, vector<256x768xbf16>, vector<8x768xf32> -> vector<8x768xf32>
    %30 = vector.broadcast %3 : vector<1x768xf32> to vector<8x768xf32>
    %31 = arith.addf %29, %30 : vector<8x768xf32>
    %32 = vector.extract_strided_slice %31 {offsets = [0, 0], sizes = [8, 256], strides = [1, 1]} : vector<8x768xf32> to vector<8x256xf32>
    %33 = arith.negf %32 : vector<8x256xf32>
    %34 = math.exp %33 : vector<8x256xf32>
    %cst_13 = arith.constant 1.000000e+00 : f32
    %35 = vector.broadcast %cst_13 : f32 to vector<8x256xf32>
    %36 = arith.addf %35, %34 : vector<8x256xf32>
    %37 = arith.divf %35, %36 : vector<8x256xf32>
    %38 = vector.extract_strided_slice %31 {offsets = [0, 256], sizes = [8, 256], strides = [1, 1]} : vector<8x768xf32> to vector<8x256xf32>
    %39 = math.tanh %38 : vector<8x256xf32>
    %40 = vector.extract_strided_slice %31 {offsets = [0, 512], sizes = [8, 256], strides = [1, 1]} : vector<8x768xf32> to vector<8x256xf32>
    %41 = arith.negf %40 : vector<8x256xf32>
    %42 = math.exp %41 : vector<8x256xf32>
    %cst_14 = arith.constant 1.000000e+00 : f32
    %43 = vector.broadcast %cst_14 : f32 to vector<8x256xf32>
    %44 = arith.addf %43, %42 : vector<8x256xf32>
    %45 = arith.divf %43, %44 : vector<8x256xf32>
    %46 = arith.mulf %37, %39 : vector<8x256xf32>
    %47 = math.tanh %46 : vector<8x256xf32>
    %48 = arith.mulf %45, %47 : vector<8x256xf32>
    %49 = arith.truncf %48 : vector<8x256xf32> to vector<8x256xbf16>
    %c1 = arith.constant 1 : index
    %c0_15 = arith.constant 0 : index
    %c0_16 = arith.constant 0 : index
    %50 = vector.load %arg2[%c1, %c0_15, %c0_16] : memref<2x256x768xbf16, #tpu.memory_space<vmem>>, vector<1x256x768xbf16>
    %51 = vector.shape_cast %50 : vector<1x256x768xbf16> to vector<256x768xbf16>
    %cst_17 = arith.constant dense<0.000000e+00> : vector<8x768xf32>
    %52 = tpu.matmul %49, %51, %cst_17 {dimension_numbers = #tpu.dot_dimension_numbers<[1], [0], [0], [1], [0, 0, 1, 1], [], []>} : vector<8x256xbf16>, vector<256x768xbf16>, vector<8x768xf32> -> vector<8x768xf32>
    %53 = vector.broadcast %4 : vector<1x768xf32> to vector<8x768xf32>
    %54 = arith.addf %52, %53 : vector<8x768xf32>
    %55 = vector.extract_strided_slice %54 {offsets = [0, 0], sizes = [8, 256], strides = [1, 1]} : vector<8x768xf32> to vector<8x256xf32>
    %56 = arith.negf %55 : vector<8x256xf32>
    %57 = math.exp %56 : vector<8x256xf32>
    %cst_18 = arith.constant 1.000000e+00 : f32
    %58 = vector.broadcast %cst_18 : f32 to vector<8x256xf32>
    %59 = arith.addf %58, %57 : vector<8x256xf32>
    %60 = arith.divf %58, %59 : vector<8x256xf32>
    %61 = vector.extract_strided_slice %54 {offsets = [0, 256], sizes = [8, 256], strides = [1, 1]} : vector<8x768xf32> to vector<8x256xf32>
    %62 = math.tanh %61 : vector<8x256xf32>
    %63 = vector.extract_strided_slice %54 {offsets = [0, 512], sizes = [8, 256], strides = [1, 1]} : vector<8x768xf32> to vector<8x256xf32>
    %64 = arith.negf %63 : vector<8x256xf32>
    %65 = math.exp %64 : vector<8x256xf32>
    %cst_19 = arith.constant 1.000000e+00 : f32
    %66 = vector.broadcast %cst_19 : f32 to vector<8x256xf32>
    %67 = arith.addf %66, %65 : vector<8x256xf32>
    %68 = arith.divf %66, %67 : vector<8x256xf32>
    %69 = arith.mulf %60, %62 : vector<8x256xf32>
    %70 = math.tanh %69 : vector<8x256xf32>
    %71 = arith.mulf %68, %70 : vector<8x256xf32>
    %72 = arith.truncf %71 : vector<8x256xf32> to vector<8x256xbf16>
    %c0_20 = arith.constant 0 : index
    %c0_21 = arith.constant 0 : index
    %73 = vector.load %arg3[%c0_20, %c0_21] : memref<256x128xbf16, #tpu.memory_space<vmem>>, vector<256x128xbf16>
    %cst_22 = arith.constant dense<0.000000e+00> : vector<8x128xf32>
    %74 = tpu.matmul %72, %73, %cst_22 {dimension_numbers = #tpu.dot_dimension_numbers<[1], [0], [0], [1], [0, 0, 1, 1], [], []>} : vector<8x256xbf16>, vector<256x128xbf16>, vector<8x128xf32> -> vector<8x128xf32>
    %75 = vector.broadcast %5 : vector<1x128xf32> to vector<8x128xf32>
    %76 = arith.addf %74, %75 : vector<8x128xf32>
    %c0_23 = arith.constant 0 : index
    %c0_24 = arith.constant 0 : index
    %77 = vector.load %arg4[%c0_23, %c0_24] : memref<8x128xf32, #tpu.memory_space<vmem>>, vector<8x128xf32>
    tpu.vector_store %arg4[%c0_23, %c0_24], %76 {strides = array<i32>} : memref<8x128xf32, #tpu.memory_space<vmem>>, vector<8x128xf32>,
    return
  }
}

</mosaic_0001>

<bundles_post_ra>
// kernel: tpu_custom_call.1
= control target key start
LH: loop header
LB: loop body
LE: loop exit
PB: predicated region body
PF: predicated region fallthrough
CT: control target
= control target key end

     0   :  { %9 = vsyncpa [#allocation3], 0  ;;  %s3603_s0 = inlined_call_operand.vmem [shape: f32[8,4], index: 0, kind: input, shape index: {}]   ;;  %s3604_s1 = inlined_call_operand.hbm [shape: f32[8,768], index: 1, kind: input, shape index: {}]   ;;  %s3605_s2 = inlined_call_operand.hbm [shape: bf16[2,256,768], index: 2, kind: input, shape index: {}]   ;;  %s3606_s3 = inlined_call_operand.hbm [shape: bf16[256,128], index: 3, kind: input, shape index: {}]   ;;  %s3607_s4 = inlined_call_operand.hbm [shape: f32[8,128], index: 4, kind: output, shape index: {}]  }
   0x1   :  { %10 = vsyncpa [#allocation6], 0  ;;  %s29_s17 = sshll.u32 %s3605_s2, 4  ;;  %s30_s17 = int_to_ptr.hbm [resolvable:$true] %s29_s17 }
   0x2   :  { %11 = vsyncpa [#allocation4], 0  ;;  %s3407_s18 = smov [#allocation5]   ;;  %s19_s22 = sshll.u32 %s3604_s1, 4  ;;  %s20_s22 = int_to_ptr.hbm [resolvable:$true] %s19_s22 }
   0x3   :  { %s31_s19 = sshll.u32 %s3407_s18, 4  ;;  %s3408_s23 = smov 384   ;;  %s32_s19 = int_to_ptr.vmem [resolvable:$true] %s31_s19 }
   0x4   :  { %s3409_s24 = smov 24   ;;  %s3410_s25 = smov [#allocation2]  }
   0x5   :  { %37 = dma.hbm_to_vmem [thread:$0]  %s30_s17, 24576, %s32_s19, [#allocation6], %s3408_s23, %s3408_s23, %s3409_s24  }
   0x6   :  { %s21_s26 = sshll.u32 %s3410_s25, 4  ;;  %s42_s29 = sshll.u32 %s3606_s3, 4  ;;  %s22_s26 = int_to_ptr.vmem [resolvable:$true] %s21_s26  ;;  %s43_s29 = int_to_ptr.hbm [resolvable:$true] %s42_s29 }
   0x7   :  { %24 = dma.hbm_to_vmem [thread:$0]  %s20_s22, 768, %s22_s26, [#allocation3]  }
   0x8   :  { %s3411_s2 = smov [#allocation7]   ;;  %s3412_s5 = smov 64  }
   0x9   :  { %s44_s30 = sshll.u32 %s3411_s2, 4  ;;  %s3413_s6 = smov 4   ;;  %s45_s30 = int_to_ptr.vmem [resolvable:$true] %s44_s30 }
   0xa   :  { %50 = dma.hbm_to_vmem [thread:$0]  %s43_s29, 2048, %s45_s30, [#allocation6], %s3412_s5, %s3412_s5, %s3413_s6  }
   0xb   :  { %3401 = dma.done.wait [#allocation3], 768  }
   0xc   :  { %3402 = vsyncadd [#allocation3], 4294966528 }
   0xd   :  { %3403 = dma.done.wait [#allocation6], 26624  }
   0xe   :  { %3404 = vsyncadd [#allocation6], 4294940672  ;;  %vm100_vm0 = vcmask 1043456   ;;  %vm96_vm1 = vcmask 31744   ;;  %v64_v0 = vld [vmem:[#allocation2] sm:$0xf] }
   0xf   :  { %v65_v1 = vld [vmem:[#allocation2 + $0x8] sm:$0xf]  ;;  %v63_v2 = vld [vmem:[%s3603_s0] sm:$0xff]  ;;  %2161 = vmatpush.msk.msra.mxu0 %vm100_vm0, %v64_v0  ;;  %v66_v3 = vld [vmem:[#allocation2 + $0x10] sm:$0xf]  ;;  %s3414_s0 = smov [#allocation8]  }
  0x10   :  { %2163 = vmatpush.msk.msra.mxu1 %vm100_vm0, %v65_v1  ;;  %v67_v4 = vld [vmem:[#allocation2 + $0x18] sm:$0xf]  ;;  %v68_v5 = vld [vmem:[#allocation2 + $0x20] sm:$0xf]  ;;  %2162 = vmatmul.msk.f32.vlgmr.msra.gmra.mxu0 %vm96_vm1, %v63_v2  ;;  %v69_v6 = vld [vmem:[#allocation2 + $0x28] sm:$0xf] }
  0x11   :  { %2164 = vmatmul.msk.f32.vlgmr.msra.gmra.mxu1 %vm96_vm1, %v63_v2  ;;  %v2347_v7 = vld [vmem:[#allocation5 + $0x150] sm:$0xf]  ;;  %v3062_v8 = vld [vmem:[#allocation5 + $0x164] sm:$0xf0]  ;;  %2165 = vmatpush.msk.msrb.mxu0 %vm100_vm0, %v66_v3  ;;  %v3059_v12 = vld [vmem:[#allocation5 + $0x154] sm:$0xf] }
  0x12   :  { %2167 = vmatpush.msk.msrb.mxu1 %vm100_vm0, %v67_v4  ;;  %v2348_v9 = vor.u32 %v3062_v8, %v2347_v7  ;;  %v2539_v10 = vld [vmem:[#allocation5 + $0x2d0] sm:$0xf]  ;;  %v3110_v11 = vld [vmem:[#allocation5 + $0x2e4] sm:$0xf0]  ;;  %v2349_v14 = vld [vmem:[#allocation5 + $0x168] sm:$0xf0] }
  0x13   :  { %2169 = vmatpush.msk.msra.mxu0 %vm100_vm0, %v68_v5  ;;  %v2540_v13 = vor.u32 %v3110_v11, %v2539_v10  ;;  %v3107_v15 = vld [vmem:[#allocation5 + $0x2d4] sm:$0xf]  ;;  %v2541_v16 = vld [vmem:[#allocation5 + $0x2e8] sm:$0xf0]  ;;  %v2323_v17 = vld [vmem:[#allocation5 + $0x120] sm:$0xf]  ;;  %v2352_v22 = vor.u32 %v3059_v12, %v2349_v14 }
  0x14   :  { %2171 = vmatpush.msk.msra.mxu1 %vm100_vm0, %v69_v6  ;;  %914 = vmatpush.bf16.msra.mxu2 %v2348_v9  ;;  %v3056_v18 = vld [vmem:[#allocation5 + $0x134] sm:$0xf0]  ;;  %v2515_v19 = vld [vmem:[#allocation5 + $0x2a0] sm:$0xf]  ;;  %v2544_v23 = vor.u32 %v3107_v15, %v2541_v16  ;;  %v3053_v24 = vld [vmem:[#allocation5 + $0x124] sm:$0xf] }
  0x15   :  { %927 = vmatpush.bf16.msra.mxu3 %v2540_v13  ;;  %v2324_v20 = vor.u32 %v3056_v18, %v2323_v17  ;;  %v3104_v21 = vld [vmem:[#allocation5 + $0x2b4] sm:$0xf0]  ;;  %v2325_v26 = vld [vmem:[#allocation5 + $0x138] sm:$0xf0]  ;;  %v3101_v27 = vld [vmem:[#allocation5 + $0x2a4] sm:$0xf] }
  0x16   :  { %v2516_v25 = vor.u32 %v3104_v21, %v2515_v19  ;;  %v2517_v28 = vld [vmem:[#allocation5 + $0x2b8] sm:$0xf0]  ;;  %v2328_v29 = vor.u32 %v3053_v24, %v2325_v26  ;;  %v2299_v31 = vld [vmem:[#allocation5 + $0xf0] sm:$0xf]  ;;  %v3050_v32 = vld [vmem:[#allocation5 + $0x104] sm:$0xf0] }
  0x17   :  { %v2520_v30 = vor.u32 %v3101_v27, %v2517_v28  ;;  %v2491_v33 = vld [vmem:[#allocation5 + $0x270] sm:$0xf]  ;;  %v2300_v34 = vor.u32 %v3050_v32, %v2299_v31  ;;  %v3098_v35 = vld [vmem:[#allocation5 + $0x284] sm:$0xf0]  ;;  %v3047_v36 = vld [vmem:[#allocation5 + $0xf4] sm:$0xf] }
  0x18   :  { %915 = vmatpush.bf16.msra.mxu2 %v2324_v20  ;;  %2166 = vmatmul.msk.f32.vlgmr.msrb.gmra.mxu0 %vm96_vm1, %v63_v2  ;;  %v2301_v37 = vld [vmem:[#allocation5 + $0x108] sm:$0xf0]  ;;  %v2492_v38 = vor.u32 %v3098_v35, %v2491_v33  ;;  %v3095_v40 = vld [vmem:[#allocation5 + $0x274] sm:$0xf]  ;;  %v2275_v43 = vld [vmem:[#allocation5 + $0xc0] sm:$0xf] }
  0x19   :  { %2168 = vmatmul.msk.f32.vlgmr.msrb.gmra.mxu1 %vm96_vm1, %v63_v2  ;;  %940 = vmatpush.bf16.msrb.mxu0 %v2352_v22  ;;  %v2304_v39 = vor.u32 %v3047_v36, %v2301_v37  ;;  %v2493_v41 = vld [vmem:[#allocation5 + $0x288] sm:$0xf0]  ;;  %v3044_v44 = vld [vmem:[#allocation5 + $0xd4] sm:$0xf0]  ;;  %v2467_v45 = vld [vmem:[#allocation5 + $0x240] sm:$0xf] }
  0x1a   :  { %953 = vmatpush.bf16.msrb.mxu1 %v2544_v23  ;;  %928 = vmatpush.bf16.msra.mxu3 %v2516_v25  ;;  %v2496_v42 = vor.u32 %v3095_v40, %v2493_v41  ;;  %v2276_v46 = vor.u32 %v3044_v44, %v2275_v43  ;;  %v3092_v47 = vld [vmem:[#allocation5 + $0x254] sm:$0xf0]  ;;  %v3041_v48 = vld [vmem:[#allocation5 + $0xc4] sm:$0xf]  ;;  %v2277_v49 = vld [vmem:[#allocation5 + $0xd8] sm:$0xf0] }
  0x1b   :  { %v2468_v50 = vor.u32 %v3092_v47, %v2467_v45  ;;  %v2280_v51 = vor.u32 %v3041_v48, %v2277_v49  ;;  %v3089_v52 = vld [vmem:[#allocation5 + $0x244] sm:$0xf]  ;;  %v2469_v53 = vld [vmem:[#allocation5 + $0x258] sm:$0xf0]  ;;  %v2251_v55 = vld [vmem:[#allocation5 + $0x90] sm:$0xf] }
  0x1c   :  { %916 = vmatpush.bf16.msra.mxu2 %v2300_v34  ;;  %v2472_v54 = vor.u32 %v3089_v52, %v2469_v53  ;;  %v3038_v56 = vld [vmem:[#allocation5 + $0xa4] sm:$0xf0]  ;;  %v2443_v58 = vld [vmem:[#allocation5 + $0x210] sm:$0xf]  ;;  %v3035_v60 = vld [vmem:[#allocation5 + $0x94] sm:$0xf] }
  0x1d   :  { %941 = vmatpush.bf16.msrb.mxu0 %v2328_v29  ;;  %v2252_v57 = vor.u32 %v3038_v56, %v2251_v55  ;;  %v3086_v59 = vld [vmem:[#allocation5 + $0x224] sm:$0xf0]  ;;  %v2253_v62 = vld [vmem:[#allocation5 + $0xa8] sm:$0xf0]  ;;  %v3083_v63 = vld [vmem:[#allocation5 + $0x214] sm:$0xf] }
  0x1e   :  { %954 = vmatpush.bf16.msrb.mxu1 %v2520_v30  ;;  %929 = vmatpush.bf16.msra.mxu3 %v2492_v38  ;;  %v2444_v61 = vor.u32 %v3086_v59, %v2443_v58  ;;  %v2256_v0 = vor.u32 %v3035_v60, %v2253_v62  ;;  %v2445_v1 = vld [vmem:[#allocation5 + $0x228] sm:$0xf0]  ;;  %v2227_v3 = vld [vmem:[#allocation5 + $0x60] sm:$0xf]  ;;  %v3032_v4 = vld [vmem:[#allocation5 + $0x74] sm:$0xf0] }
  0x1f   :  { %v2419_v5 = vld [vmem:[#allocation5 + $0x1e0] sm:$0xf]  ;;  %v2228_v6 = vor.u32 %v3032_v4, %v2227_v3  ;;  %v3080_v7 = vld [vmem:[#allocation5 + $0x1f4] sm:$0xf0]  ;;  %v3029_v8 = vld [vmem:[#allocation5 + $0x64] sm:$0xf] }
  0x20   :  { %2170 = vmatmul.msk.f32.vlgmr.msra.gmra.mxu0 %vm96_vm1, %v63_v2  ;;  %917 = vmatpush.bf16.msra.mxu2 %v2276_v46  ;;  %v2229_v9 = vld [vmem:[#allocation5 + $0x78] sm:$0xf0]  ;;  %v2420_v10 = vor.u32 %v3080_v7, %v2419_v5  ;;  %v3077_v12 = vld [vmem:[#allocation5 + $0x1e4] sm:$0xf]  ;;  %v2203_v15 = vld [vmem:[#allocation5 + $0x30] sm:$0xf] }
  0x21   :  { %2172 = vmatmul.msk.f32.vlgmr.msra.gmra.mxu1 %vm96_vm1, %v63_v2  ;;  %942 = vmatpush.bf16.msrb.mxu0 %v2304_v39  ;;  %v2448_v2 = vor.u32 %v3083_v63, %v2445_v1  ;;  %v2232_v11 = vor.u32 %v3029_v8, %v2229_v9  ;;  %v2421_v13 = vld [vmem:[#allocation5 + $0x1f8] sm:$0xf0]  ;;  %v3026_v16 = vld [vmem:[#allocation5 + $0x44] sm:$0xf0]  ;;  %v2395_v17 = vld [vmem:[#allocation5 + $0x1b0] sm:$0xf] }
  0x22   :  { %955 = vmatpush.bf16.msrb.mxu1 %v2496_v42  ;;  %930 = vmatpush.bf16.msra.mxu3 %v2468_v50  ;;  %v2424_v14 = vor.u32 %v3077_v12, %v2421_v13  ;;  %v2204_v18 = vor.u32 %v3026_v16, %v2203_v15  ;;  %v3074_v19 = vld [vmem:[#allocation5 + $0x1c4] sm:$0xf0]  ;;  %v3023_v20 = vld [vmem:[#allocation5 + $0x34] sm:$0xf]  ;;  %v2205_v21 = vld [vmem:[#allocation5 + $0x48] sm:$0xf0] }
  0x23   :  { %v2396_v22 = vor.u32 %v3074_v19, %v2395_v17  ;;  %v2208_v23 = vor.u32 %v3023_v20, %v2205_v21  ;;  %v3071_v24 = vld [vmem:[#allocation5 + $0x1b4] sm:$0xf]  ;;  %v2397_v25 = vld [vmem:[#allocation5 + $0x1c8] sm:$0xf0]  ;;  %v2179_v29 = vld [vmem:[#allocation5] sm:$0xf] }
  0x24   :  { %918 = vmatpush.bf16.msra.mxu2 %v2252_v57  ;;  %v71_v26 = vld [vmem:[#allocation2 + $0x4] ss:$8 sm:$0xf]  ;;  %v2400_v28 = vor.u32 %v3071_v24, %v2397_v25  ;;  %v3020_v30 = vld [vmem:[#allocation5 + $0x14] sm:$0xf0]  ;;  %s2148_s3 = sshll.u32 %s3414_s0, 4  ;;  %s2149_s3 = int_to_ptr.vmem [resolvable:$true] %s2148_s3 }
  0x25   :  { %943 = vmatpush.bf16.msrb.mxu0 %v2280_v51  ;;  %v72_v27 = vld [vmem:[#allocation2 + $0x4] ss:$8 sm:$0x30]  ;;  %v2371_v31 = vld [vmem:[#allocation5 + $0x180] sm:$0xf]  ;;  %v2180_v32 = vor.u32 %v3020_v30, %v2179_v29  ;;  %s2150_s10 = sshll.u32 %s3607_s4, 4  ;;  %s2151_s10 = int_to_ptr.hbm [resolvable:$true] %s2150_s10 }
  0x26   :  { %956 = vmatpush.bf16.msrb.mxu1 %v2472_v54  ;;  %931 = vmatpush.bf16.msra.mxu3 %v2444_v61  ;;  %v3068_v33 = vld [vmem:[#allocation5 + $0x194] sm:$0xf0]  ;;  %v3017_v34 = vld [vmem:[#allocation5 + $0x4] sm:$0xf]  ;;  %v2181_v35 = vld [vmem:[#allocation5 + $0x18] sm:$0xf0]  ;;  %v3464_v45 = vor.u32 %v72_v27, %v71_v26 }
  0x27   :  { %v2372_v36 = vor.u32 %v3068_v33, %v2371_v31  ;;  %v2184_v37 = vor.u32 %v3017_v34, %v2181_v35  ;;  %v3065_v38 = vld [vmem:[#allocation5 + $0x184] sm:$0xf]  ;;  %v2373_v39 = vld [vmem:[#allocation5 + $0x198] sm:$0xf0]  ;;  %v2355_v40 = vld [vmem:[#allocation5 + $0x158] sm:$0xf] }
  0x28   :  { %919 = vmatpush.bf16.msra.mxu2 %v2228_v6  ;;  %v2376_v41 = vor.u32 %v3065_v38, %v2373_v39  ;;  %v3063_v42 = vld [vmem:[#allocation5 + $0x16c] sm:$0xf0]  ;;  %v2547_v43 = vld [vmem:[#allocation5 + $0x2d8] sm:$0xf]  ;;  %v3060_v48 = vld [vmem:[#allocation5 + $0x15c] sm:$0xf] }
  0x29   :  { %944 = vmatpush.bf16.msrb.mxu0 %v2256_v0  ;;  %v3111_v44 = vld [vmem:[#allocation5 + $0x2ec] sm:$0xf0]  ;;  %v2356_v46 = vor.u32 %v3063_v42, %v2355_v40  ;;  %v2357_v49 = vld [vmem:[#allocation5 + $0x170] sm:$0xf0]  ;;  %v3108_v50 = vld [vmem:[#allocation5 + $0x2dc] sm:$0xf] }
  0x2a   :  { %957 = vmatpush.bf16.msrb.mxu1 %v2448_v2  ;;  %932 = vmatpush.bf16.msra.mxu3 %v2420_v10  ;;  %v2548_v47 = vor.u32 %v3111_v44, %v2547_v43  ;;  %v2360_v51 = vor.u32 %v3060_v48, %v2357_v49  ;;  %v2549_v52 = vld [vmem:[#allocation5 + $0x2f0] sm:$0xf0]  ;;  %v2331_v53 = vld [vmem:[#allocation5 + $0x128] sm:$0xf]  ;;  %v3057_v54 = vld [vmem:[#allocation5 + $0x13c] sm:$0xf0] }
  0x2b   :  { %v2552_v55 = vor.u32 %v3108_v50, %v2549_v52  ;;  %v2332_v56 = vor.u32 %v3057_v54, %v2331_v53  ;;  %v2523_v57 = vld [vmem:[#allocation5 + $0x2a8] sm:$0xf]  ;;  %v3105_v58 = vld [vmem:[#allocation5 + $0x2bc] sm:$0xf0]  ;;  %v3054_v59 = vld [vmem:[#allocation5 + $0x12c] sm:$0xf] }
  0x2c   :  { %920 = vmatpush.bf16.msra.mxu2 %v2204_v18  ;;  %v2524_v60 = vor.u32 %v3105_v58, %v2523_v57  ;;  %v2333_v61 = vld [vmem:[#allocation5 + $0x140] sm:$0xf0]  ;;  %v3102_v62 = vld [vmem:[#allocation5 + $0x2ac] sm:$0xf]  ;;  %v84_v0 = vperm.slane %v3464_v45, 0  ;;  %v85_v1 = vperm.slane %v3464_v45, 1 }
  0x2d   :  { %945 = vmatpush.bf16.msrb.mxu0 %v2232_v11  ;;  %v2525_v63 = vld [vmem:[#allocation5 + $0x2c0] sm:$0xf0]  ;;  %v2336_v2 = vor.u32 %v3054_v59, %v2333_v61  ;;  %v2307_v4 = vld [vmem:[#allocation5 + $0xf8] sm:$0xf]  ;;  %v3051_v5 = vld [vmem:[#allocation5 + $0x10c] sm:$0xf0] }
  0x2e   :  { %958 = vmatpush.bf16.msrb.mxu1 %v2424_v14  ;;  %933 = vmatpush.bf16.msra.mxu3 %v2396_v22  ;;  %v2528_v3 = vor.u32 %v3102_v62, %v2525_v63  ;;  %v2499_v6 = vld [vmem:[#allocation5 + $0x278] sm:$0xf]  ;;  %v2308_v7 = vor.u32 %v3051_v5, %v2307_v4  ;;  %v3099_v8 = vld [vmem:[#allocation5 + $0x28c] sm:$0xf0]  ;;  %v3048_v9 = vld [vmem:[#allocation5 + $0xfc] sm:$0xf] }
  0x2f   :  { %v2309_v10 = vld [vmem:[#allocation5 + $0x110] sm:$0xf0]  ;;  %v2500_v13 = vor.u32 %v3099_v8, %v2499_v6  ;;  %v3096_v15 = vld [vmem:[#allocation5 + $0x27c] sm:$0xf]  ;;  %v2283_v20 = vld [vmem:[#allocation5 + $0xc8] sm:$0xf] }
  0x30   :  { %921 = vmatpush.bf16.msra.mxu2 %v2180_v32  ;;  %v2312_v14 = vor.u32 %v3048_v9, %v2309_v10  ;;  %v2501_v16 = vld [vmem:[#allocation5 + $0x290] sm:$0xf0]  ;;  %v3045_v21 = vld [vmem:[#allocation5 + $0xdc] sm:$0xf0]  ;;  %v2475_v22 = vld [vmem:[#allocation5 + $0x248] sm:$0xf] }
  0x31   :  { %946 = vmatpush.bf16.msrb.mxu0 %v2208_v23  ;;  %v2504_v19 = vor.u32 %v3096_v15, %v2501_v16  ;;  %v2284_v25 = vor.u32 %v3045_v21, %v2283_v20  ;;  %v3093_v26 = vld [vmem:[#allocation5 + $0x25c] sm:$0xf0]  ;;  %v2285_v29 = vld [vmem:[#allocation5 + $0xe0] sm:$0xf0]  ;;  %v3090_v30 = vld [vmem:[#allocation5 + $0x24c] sm:$0xf] }
  0x32   :  { %959 = vmatpush.bf16.msrb.mxu1 %v2400_v28  ;;  %934 = vmatpush.bf16.msra.mxu3 %v2372_v36  ;;  %v2476_v27 = vor.u32 %v3093_v26, %v2475_v22  ;;  %v3042_v28 = vld [vmem:[#allocation5 + $0xcc] sm:$0xf]  ;;  %v2477_v32 = vld [vmem:[#allocation5 + $0x260] sm:$0xf0]  ;;  %v2259_v34 = vld [vmem:[#allocation5 + $0x98] sm:$0xf] }
  0x33   :  { %v2288_v31 = vor.u32 %v3042_v28, %v2285_v29  ;;  %v2480_v33 = vor.u32 %v3090_v30, %v2477_v32  ;;  %v3039_v35 = vld [vmem:[#allocation5 + $0xac] sm:$0xf0]  ;;  %v2451_v36 = vld [vmem:[#allocation5 + $0x218] sm:$0xf]  ;;  %v3036_v39 = vld [vmem:[#allocation5 + $0x9c] sm:$0xf] }
  0x34   :  { %966 = vmatpush.bf16.msrb.mxu2 %v2356_v46  ;;  %v3087_v38 = vld [vmem:[#allocation5 + $0x22c] sm:$0xf0]  ;;  %v2261_v40 = vld [vmem:[#allocation5 + $0xb0] sm:$0xf0]  ;;  %v3084_v46 = vld [vmem:[#allocation5 + $0x21c] sm:$0xf] }
  0x35   :  { %947 = vmatpush.bf16.msrb.mxu0 %v2184_v37  ;;  %v2260_v37 = vor.u32 %v3039_v35, %v2259_v34  ;;  %v2452_v43 = vor.u32 %v3087_v38, %v2451_v36  ;;  %v2264_v44 = vor.u32 %v3036_v39, %v2261_v40  ;;  %v2235_v49 = vld [vmem:[#allocation5 + $0x68] sm:$0xf]  ;;  %v3033_v50 = vld [vmem:[#allocation5 + $0x7c] sm:$0xf0]  ;;  %v3078_v61 = vld [vmem:[#allocation5 + $0x1ec] sm:$0xf] }
  0x36   :  { %960 = vmatpush.bf16.msrb.mxu1 %v2376_v41  ;;  %979 = vmatpush.bf16.msrb.mxu3 %v2548_v47  ;;  %v2453_v47 = vld [vmem:[#allocation5 + $0x230] sm:$0xf0]  ;;  %v2236_v53 = vor.u32 %v3033_v50, %v2235_v49  ;;  %v3081_v54 = vld [vmem:[#allocation5 + $0x1fc] sm:$0xf0]  ;;  %v2429_v62 = vld [vmem:[#allocation5 + $0x200] sm:$0xf0] }
  0x37   :  { %v2456_v48 = vor.u32 %v3084_v46, %v2453_v47  ;;  %v3027_v4 = vld [vmem:[#allocation5 + $0x4c] sm:$0xf0]  ;;  %v2403_v8 = vld [vmem:[#allocation5 + $0x1b8] sm:$0xf]  ;;  %v86_v10 = vperm.slane %v3464_v45, 2  ;;  %v87_v38 = vperm.slane %v3464_v45, 3 }
  0x38   :  { %967 = vmatpush.bf16.msrb.mxu2 %v2332_v56  ;;  %v2237_v56 = vld [vmem:[#allocation5 + $0x80] sm:$0xf0]  ;;  %v3075_v9 = vld [vmem:[#allocation5 + $0x1cc] sm:$0xf0]  ;;  %v2379_v26 = vld [vmem:[#allocation5 + $0x188] sm:$0xf] }
  0x39   :  { %992 = vmatpush.bf16.msra.mxu0 %v2360_v51  ;;  %v2427_v51 = vld [vmem:[#allocation5 + $0x1e8] sm:$0xf]  ;;  %v2404_v15 = vor.u32 %v3075_v9, %v2403_v8  ;;  %v3018_v28 = vld [vmem:[#allocation5 + $0xc] sm:$0xf]  ;;  %v2189_v32 = vld [vmem:[#allocation5 + $0x20] sm:$0xf0] }
  0x3a   :  { %1005 = vmatpush.bf16.msra.mxu1 %v2552_v55  ;;  %980 = vmatpush.bf16.msrb.mxu3 %v2524_v60  ;;  %v3030_v55 = vld [vmem:[#allocation5 + $0x6c] sm:$0xf]  ;;  %v2428_v59 = vor.u32 %v3081_v54, %v2427_v51  ;;  %v2381_v34 = vld [vmem:[#allocation5 + $0x1a0] sm:$0xf0]  ;;  %v2192_v36 = vor.u32 %v3018_v28, %v2189_v32 }
  0x3b   :  { %v2240_v60 = vor.u32 %v3030_v55, %v2237_v56  ;;  %v3109_v28 = vld [vmem:[#allocation5 + $0x2e4] sm:$0xf] }
  0x3c   :  { %968 = vmatpush.bf16.msrb.mxu2 %v2308_v7 }
  0x3d   :  { %993 = vmatpush.bf16.msra.mxu0 %v2336_v2  ;;  %v2432_v2 = vor.u32 %v3078_v61, %v2429_v62 }
  0x3e   :  { %1006 = vmatpush.bf16.msra.mxu1 %v2528_v3  ;;  %981 = vmatpush.bf16.msrb.mxu3 %v2500_v13  ;;  %v2211_v3 = vld [vmem:[#allocation5 + $0x38] sm:$0xf]  ;;  %v3024_v13 = vld [vmem:[#allocation5 + $0x3c] sm:$0xf] }
  0x3f   :  { %v2212_v7 = vor.u32 %v3027_v4, %v2211_v3 }
  0x40   :  { %969 = vmatpush.bf16.msrb.mxu2 %v2284_v25 }
  0x41   :  { %994 = vmatpush.bf16.msra.mxu0 %v2312_v14  ;;  %v2213_v14 = vld [vmem:[#allocation5 + $0x50] sm:$0xf0] }
  0x42   :  { %1007 = vmatpush.bf16.msra.mxu1 %v2504_v19  ;;  %982 = vmatpush.bf16.msrb.mxu3 %v2476_v27  ;;  %v2216_v16 = vor.u32 %v3024_v13, %v2213_v14  ;;  %v2187_v19 = vld [vmem:[#allocation5 + $0x8] sm:$0xf]  ;;  %v3069_v27 = vld [vmem:[#allocation5 + $0x19c] sm:$0xf0] }
  0x44   :  { %970 = vmatpush.bf16.msrb.mxu2 %v2260_v37 }
  0x45   :  { %995 = vmatpush.bf16.msra.mxu0 %v2288_v31  ;;  %v2380_v31 = vor.u32 %v3069_v27, %v2379_v26 }
  0x46   :  { %1008 = vmatpush.bf16.msra.mxu1 %v2480_v33  ;;  %983 = vmatpush.bf16.msrb.mxu3 %v2452_v43  ;;  %v3066_v33 = vld [vmem:[#allocation5 + $0x18c] sm:$0xf] }
  0x47   :  { %v2384_v39 = vor.u32 %v3066_v33, %v2381_v34  ;;  %v2339_v34 = vld [vmem:[#allocation5 + $0x130] sm:$0xf] }
  0x48   :  { %971 = vmatpush.bf16.msrb.mxu2 %v2236_v53 }
  0x49   :  { %996 = vmatpush.bf16.msra.mxu0 %v2264_v44 }
  0x4a   :  { %1009 = vmatpush.bf16.msra.mxu1 %v2456_v48  ;;  %984 = vmatpush.bf16.msrb.mxu3 %v2428_v59 }
  0x4c   :  { %972 = vmatpush.bf16.msrb.mxu2 %v2212_v7 }
  0x4d   :  { %997 = vmatpush.bf16.msra.mxu0 %v2240_v60 }
  0x4e   :  { %1010 = vmatpush.bf16.msra.mxu1 %v2432_v2  ;;  %985 = vmatpush.bf16.msrb.mxu3 %v2404_v15  ;;  %v2363_v15 = vld [vmem:[#allocation5 + $0x160] sm:$0xf] }
  0x51   :  { %998 = vmatpush.bf16.msra.mxu0 %v2216_v16  ;;  %v3064_v16 = vld [vmem:[#allocation5 + $0x174] sm:$0xf0] }
  0x52   :  { %986 = vmatpush.bf16.msrb.mxu3 %v2380_v31  ;;  %v2364_v32 = vor.u32 %v3064_v16, %v2363_v15  ;;  %v2459_v15 = vld [vmem:[#allocation5 + $0x220] sm:$0xf]  ;;  %v3088_v16 = vld [vmem:[#allocation5 + $0x234] sm:$0xf0] }
  0x55   :  { %999 = vmatpush.bf16.msra.mxu0 %v2192_v36 }
  0x8d   :  { %v136_v11 = vpop.f32.mrf.mxu0 }
  0x8e   :  { %v156_v12 = vpop.f32.mrf.mxu1  ;;  %v137_v17 = vadd.f32 %v136_v11, %v84_v0  ;;  %v88_v0 = vperm.slane %v3464_v45, 4 }
  0x8f   :  { %v157_v18 = vadd.f32 %v156_v12, %v85_v1  ;;  %v89_v1 = vperm.slane %v3464_v45, 5 }
  0x90   :  { %v2173_v23 = vmul.f32 -1.442695, %v137_v17  ;;  %v3072_v17 = vld [vmem:[#allocation5 + $0x1bc] sm:$0xf] }
  0x91   :  { %v2174_v24 = vmul.f32 -1.442695, %v157_v18  ;;  %v2405_v18 = vld [vmem:[#allocation5 + $0x1d0] sm:$0xf0] }
  0x92   :  { %3233 = vpow2.f32 %v2173_v23  ;;  %v2408_v22 = vor.u32 %v3072_v17, %v2405_v18  ;;  %v3021_v23 = vld [vmem:[#allocation5 + $0x1c] sm:$0xf0] }
  0x93   :  { %3235 = vpow2.f32 %v2174_v24  ;;  %v2188_v25 = vor.u32 %v3021_v23, %v2187_v19  ;;  %v3061_v19 = vld [vmem:[#allocation5 + $0x164] sm:$0xf] }
  0x94   :  { %1011 = vmatpush.bf16.msra.mxu1 %v2408_v22 }
  0x95   :  { %v3468_v41 = vpop.f32.mrf.mxu0  ;;  %973 = vmatpush.bf16.msrb.mxu2 %v2188_v25  ;;  %v3112_v25 = vld [vmem:[#allocation5 + $0x2f4] sm:$0xf0] }
  0x96   :  { %v3470_v42 = vpop.f32.mrf.mxu1  ;;  %v177_v43 = vadd.f32 %v3468_v41, %v86_v10 }
  0x97   :  { %v197_v50 = vadd.f32 %v3470_v42, %v87_v38  ;;  %v3055_v38 = vld [vmem:[#allocation5 + $0x134] sm:$0xf] }
  0x98   :  { %v3234_v52 = vpop.eup %3233  ;;  %1012 = vmatpush.bf16.msra.mxu1 %v2384_v39  ;;  %v2341_v39 = vld [vmem:[#allocation5 + $0x148] sm:$0xf0] }
  0x99   :  { %v3236_v57 = vpop.eup %3235  ;;  %v3472_v58 = vadd.f32 1.0, %v3234_v52 }
  0x9a   :  { %v3474_v63 = vadd.f32 1.0, %v3236_v57 }
  0x9b   :  { %3237 = vrcp.f32 %v3472_v58  ;;  %vm252_vm3 = vweird.f32 %v3472_v58  ;;  %v258_v49 = vand.u32 2147483648, %v3472_v58  ;;  %v256_v51 = vand.u32 2147483647, %v3472_v58 }
  0x9c   :  { %3239 = vrcp.f32 %v3474_v63  ;;  %v273_v41 = vand.u32 2147483648, %v3474_v63  ;;  %vm267_vm6 = vweird.f32 %v3474_v63  ;;  %v271_v56 = vand.u32 2147483647, %v3474_v63 }
  0x9d   :  { %v216_v5 = vpop.f32.mrf.mxu0  ;;  %v259_v57 = vor.u32 1.1754944e-38, %v258_v49  ;;  %vm257_vm8 = vcmp.eq.f32.partialorder %v256_v51, 8.507059e+37  ;;  %v2533_v49 = vld [vmem:[#allocation5 + $0x2c8] sm:$0xf0]  ;;  %v2315_v51 = vld [vmem:[#allocation5 + $0x100] sm:$0xf] }
  0x9e   :  { %v236_v6 = vpop.f32.mrf.mxu1  ;;  %v217_v11 = vadd.f32 %v216_v5, %v88_v0  ;;  %v274_v59 = vor.u32 1.1754944e-38, %v273_v41  ;;  %vm272_vm9 = vcmp.eq.f32.partialorder %v271_v56, 8.507059e+37  ;;  %v2317_v41 = vld [vmem:[#allocation5 + $0x118] sm:$0xf0]  ;;  %v2507_v56 = vld [vmem:[#allocation5 + $0x280] sm:$0xf] }
  0x9f   :  { %v237_v12 = vadd.f32 %v236_v6, %v89_v1 }
  0xa0   :  { %v2175_v20 = vmul.f32 -1.442695, %v217_v11 }
  0xa1   :  { %v2176_v21 = vmul.f32 -1.442695, %v237_v12  ;;  %v3238_v24 = vpop.eup %3237 }
  0xa2   :  { %v3240_v29 = vpop.eup %3239  ;;  %v248_v30 = vmul.f32 %v3238_v24, %v3472_v58  ;;  %3241 = vpow2.f32 %v2175_v20  ;;  %vm253_vm2 = vweird.f32 %v3238_v24  ;;  %v2365_v20 = vld [vmem:[#allocation5 + $0x178] sm:$0xf0] }
  0xa3   :  { %v263_v35 = vmul.f32 %v3240_v29, %v3474_v63  ;;  %3243 = vpow2.f32 %v2176_v21  ;;  %vm268_vm4 = vweird.f32 %v3240_v29  ;;  %vm254_vm5 = vmor %vm252_vm3, %vm253_vm2  ;;  %v2368_v33 = vor.u32 %v3061_v19, %v2365_v20 }
  0xa4   :  { %v249_v37 = vsub.f32 1.0, %v248_v30  ;;  %3245 = vtanh.f32 %v177_v43  ;;  %vm269_vm7 = vmor %vm267_vm6, %vm268_vm4 }
  0xa5   :  { %v264_v40 = vsub.f32 1.0, %v263_v35 }
  0xa6   :  { %v250_v44 = vmul.f32 %v3238_v24, %v249_v37  ;;  %v3058_v37 = vld [vmem:[#allocation5 + $0x144] sm:$0xf0] }
  0xa7   :  { %v265_v46 = vmul.f32 %v3240_v29, %v264_v40 }
  0xa8   :  { %v3242_v47 = vpop.eup %3241  ;;  %v251_v48 = vadd.f32 %v3238_v24, %v250_v44  ;;  %v2531_v44 = vld [vmem:[#allocation5 + $0x2b0] sm:$0xf] }
  0xa9   :  { %v3244_v45 = vpop.eup %3243  ;;  %v266_v52 = vadd.f32 %v3240_v29, %v265_v46  ;;  %v285_v53 = vadd.f32 1.0, %v3242_v47  ;;  %v3106_v47 = vld [vmem:[#allocation5 + $0x2c4] sm:$0xf0] }
  0xaa   :  { %v286_v54 = vadd.f32 1.0, %v3244_v45  ;;  %v255_v55 = vsel %vm254_vm5, %v3238_v24, %v251_v48  ;;  %v3246_v60 = vpop.eup %3245  ;;  %v2555_v24 = vld [vmem:[#allocation5 + $0x2e0] sm:$0xf]  ;;  %v3103_v48 = vld [vmem:[#allocation5 + $0x2b4] sm:$0xf]  ;;  %v2344_v45 = vor.u32 %v3055_v38, %v2341_v39 }
  0xab   :  { %3247 = vrcp.f32 %v285_v53  ;;  %v270_v42 = vsel %vm269_vm7, %v3240_v29, %v266_v52  ;;  %v260_v58 = vsel %vm257_vm8, %v259_v57, %v255_v55  ;;  %v298_v6 = vand.u32 2147483648, %v285_v53  ;;  %v2557_v29 = vld [vmem:[#allocation5 + $0x2f8] sm:$0xf0]  ;;  %v3052_v52 = vld [vmem:[#allocation5 + $0x114] sm:$0xf0] }
  0xac   :  { %3249 = vtanh.f32 %v197_v50  ;;  %v275_v61 = vsel %vm272_vm9, %v274_v59, %v270_v42  ;;  %v317_v0 = vmul.f32 %v3246_v60, %v260_v58  ;;  %v296_v8 = vand.u32 2147483647, %v285_v53  ;;  %v3100_v57 = vld [vmem:[#allocation5 + $0x294] sm:$0xf0]  ;;  %v3097_v42 = vld [vmem:[#allocation5 + $0x284] sm:$0xf] }
  0xad   :  { %3251 = vrcp.f32 %v286_v54  ;;  %vm292_vm11 = vweird.f32 %v285_v53  ;;  %v313_v10 = vand.u32 2147483648, %v286_v54  ;;  %v311_v13 = vand.u32 2147483647, %v286_v54  ;;  %v2509_v58 = vld [vmem:[#allocation5 + $0x298] sm:$0xf0] }
  0xae   :  { %3253 = vtanh.f32 %v317_v0  ;;  %v299_v14 = vor.u32 1.1754944e-38, %v298_v6  ;;  %vm297_vm14 = vcmp.eq.f32.partialorder %v296_v8, 8.507059e+37  ;;  %vm307_vm15 = vweird.f32 %v286_v54  ;;  %v3043_v0 = vld [vmem:[#allocation5 + $0xd4] sm:$0xf]  ;;  %v2485_v6 = vld [vmem:[#allocation5 + $0x268] sm:$0xf0] }
  0xaf   :  { %v314_v23 = vor.u32 1.1754944e-38, %v313_v10  ;;  %vm312_vm1 = vcmp.eq.f32.partialorder %v311_v13, 8.507059e+37  ;;  %v2556_v40 = vor.u32 %v3112_v25, %v2555_v24  ;;  %v2560_v43 = vor.u32 %v3109_v28, %v2557_v29  ;;  %v3040_v10 = vld [vmem:[#allocation5 + $0xb4] sm:$0xf0]  ;;  %v2245_v24 = vld [vmem:[#allocation5 + $0x88] sm:$0xf0] }
  0xb0   :  { %v2340_v50 = vor.u32 %v3058_v37, %v2339_v34  ;;  %v2536_v55 = vor.u32 %v3103_v48, %v2533_v49  ;;  %v2316_v59 = vor.u32 %v3052_v52, %v2315_v51  ;;  %v2460_v25 = vor.u32 %v3088_v16, %v2459_v15  ;;  %v3082_v28 = vld [vmem:[#allocation5 + $0x204] sm:$0xf0]  ;;  %v3079_v29 = vld [vmem:[#allocation5 + $0x1f4] sm:$0xf]  ;;  %v3028_v34 = vld [vmem:[#allocation5 + $0x54] sm:$0xf0] }
  0xb1   :  { %v3248_v62 = vpop.eup %3247  ;;  %v2221_v37 = vld [vmem:[#allocation5 + $0x58] sm:$0xf0]  ;;  %v3019_v51 = vld [vmem:[#allocation5 + $0x14] sm:$0xf]  ;;  %v2197_v52 = vld [vmem:[#allocation5 + $0x28] sm:$0xf0] }
  0xb2   :  { %v3250_v1 = vpop.eup %3249  ;;  %v288_v2 = vmul.f32 %v3248_v62, %v285_v53  ;;  %vm293_vm10 = vweird.f32 %v3248_v62  ;;  %v3049_v53 = vld [vmem:[#allocation5 + $0x104] sm:$0xf]  ;;  %v3194_v15 = vld [vmem:[#allocation5 + $0x584] sm:$0xf0]  ;;  %v3191_v16 = vld [vmem:[#allocation5 + $0x574] sm:$0xf] }
  0xb3   :  { %v3252_v3 = vpop.eup %3251  ;;  %v318_v4 = vmul.f32 %v3250_v1, %v275_v61  ;;  %vm294_vm13 = vmor %vm292_vm11, %vm293_vm10  ;;  %v2320_v60 = vor.u32 %v3049_v53, %v2317_v41  ;;  %v2291_v61 = vld [vmem:[#allocation5 + $0xd0] sm:$0xf]  ;;  %v2293_v1 = vld [vmem:[#allocation5 + $0xe8] sm:$0xf0] }
  0xb4   :  { %v289_v5 = vsub.f32 1.0, %v288_v2  ;;  %v303_v63 = vmul.f32 %v3252_v3, %v286_v54  ;;  %vm308_vm12 = vweird.f32 %v3252_v3  ;;  %v3254_v21 = vpop.eup %3253  ;;  %v2532_v54 = vor.u32 %v3106_v47, %v2531_v44  ;;  %v3073_v44 = vld [vmem:[#allocation5 + $0x1c4] sm:$0xf]  ;;  %v2413_v47 = vld [vmem:[#allocation5 + $0x1d8] sm:$0xf0] }
  0xb5   :  { %3255 = vtanh.f32 %v318_v4  ;;  %vm309_vm0 = vmor %vm307_vm15, %vm308_vm12  ;;  %v2508_v2 = vor.u32 %v3100_v57, %v2507_v56  ;;  %v2483_v4 = vld [vmem:[#allocation5 + $0x250] sm:$0xf]  ;;  %v2296_v8 = vor.u32 %v3043_v0, %v2293_v1  ;;  %v2416_v41 = vor.u32 %v3073_v44, %v2413_v47  ;;  %v3067_v56 = vld [vmem:[#allocation5 + $0x194] sm:$0xf] }
  0xb6   :  { %v290_v7 = vmul.f32 %v3248_v62, %v289_v5  ;;  %v304_v9 = vsub.f32 1.0, %v303_v63  ;;  %v3094_v5 = vld [vmem:[#allocation5 + $0x264] sm:$0xf0]  ;;  %v3091_v63 = vld [vmem:[#allocation5 + $0x254] sm:$0xf] }
  0xb7   :  { %v2484_v13 = vor.u32 %v3094_v5, %v2483_v4  ;;  %v2389_v57 = vld [vmem:[#allocation5 + $0x1a8] sm:$0xf0]  ;;  %v3203_v0 = vld [vmem:[#allocation5 + $0x5d4] sm:$0xf]  ;;  %v2903_v4 = vld [vmem:[#allocation5 + $0x5a0] sm:$0xf] }
  0xb8   :  { %v291_v11 = vadd.f32 %v3248_v62, %v290_v7  ;;  %v305_v12 = vmul.f32 %v3252_v3, %v304_v9  ;;  %v2267_v9 = vld [vmem:[#allocation5 + $0xa0] sm:$0xf]  ;;  %v3200_v5 = vld [vmem:[#allocation5 + $0x5b4] sm:$0xf0]  ;;  %v3182_v44 = vld [vmem:[#allocation5 + $0x524] sm:$0xf0] }
  0xb9   :  { %v2268_v19 = vor.u32 %v3040_v10, %v2267_v9  ;;  %v2735_v9 = vld [vmem:[#allocation5 + $0x450] sm:$0xf]  ;;  %v3179_v47 = vld [vmem:[#allocation5 + $0x514] sm:$0xf] }
  0xba   :  { %v295_v17 = vsel %vm294_vm13, %v3248_v62, %v291_v11  ;;  %v306_v18 = vadd.f32 %v3252_v3, %v305_v12  ;;  %v3046_v62 = vld [vmem:[#allocation5 + $0xe4] sm:$0xf0]  ;;  %v3037_v11 = vld [vmem:[#allocation5 + $0xa4] sm:$0xf]  ;;  %v2269_v12 = vld [vmem:[#allocation5 + $0xb8] sm:$0xf0] }
  0xbb   :  { %v300_v22 = vsel %vm297_vm14, %v299_v14, %v295_v17  ;;  %v3256_v30 = vpop.eup %3255  ;;  %v2292_v7 = vor.u32 %v3046_v62, %v2291_v61  ;;  %v2488_v14 = vor.u32 %v3091_v63, %v2485_v6  ;;  %v3085_v17 = vld [vmem:[#allocation5 + $0x224] sm:$0xf]  ;;  %v2272_v20 = vor.u32 %v3037_v11, %v2269_v12  ;;  %v2927_v61 = vld [vmem:[#allocation5 + $0x5d0] sm:$0xf]  ;;  %v3206_v62 = vld [vmem:[#allocation5 + $0x5e4] sm:$0xf0] }
  0xbc   :  { %v310_v26 = vsel %vm309_vm0, %v3252_v3, %v306_v18  ;;  %v321_v27 = vmul.f32 %v3254_v21, %v300_v22  ;;  %v2512_v3 = vor.u32 %v3097_v42, %v2509_v58  ;;  %v2461_v18 = vld [vmem:[#allocation5 + $0x238] sm:$0xf0]  ;;  %v2243_v21 = vld [vmem:[#allocation5 + $0x70] sm:$0xf]  ;;  %v3034_v22 = vld [vmem:[#allocation5 + $0x84] sm:$0xf0]  ;;  %v2200_v58 = vor.u32 %v3019_v51, %v2197_v52 }
  0xbd   :  { %v315_v31 = vsel %vm312_vm1, %v314_v23, %v310_v26  ;;  %v3031_v23 = vld [vmem:[#allocation5 + $0x74] sm:$0xf]  ;;  %v2464_v26 = vor.u32 %v3085_v17, %v2461_v18  ;;  %v2928_v1 = vor.u32 %v3206_v62, %v2927_v61  ;;  %v3197_v63 = vld [vmem:[#allocation5 + $0x5a4] sm:$0xf]  ;;  %v2904_v6 = vor.u32 %v3200_v5, %v2903_v4  ;;  %v2663_v51 = vld [vmem:[#allocation5 + $0x3c0] sm:$0xf] }
  0xbe   :  { %v3492_v35 = vpack.c.bf16 %v321_v27, %v321_v27  ;;  %v322_v36 = vmul.f32 %v3256_v30, %v315_v31  ;;  %v2435_v27 = vld [vmem:[#allocation5 + $0x1f0] sm:$0xf]  ;;  %v2437_v30 = vld [vmem:[#allocation5 + $0x208] sm:$0xf0]  ;;  %v2244_v31 = vor.u32 %v3034_v22, %v2243_v21  ;;  %v3155_v11 = vld [vmem:[#allocation5 + $0x454] sm:$0xf] }
  0xbf   :  { %v2436_v38 = vor.u32 %v3082_v28, %v2435_v27  ;;  %v2440_v39 = vor.u32 %v3079_v29, %v2437_v30  ;;  %v75_v12 = vld [vmem:[#allocation2 + $0x5] ss:$8 sm:$0xf]  ;;  %v2711_v21 = vld [vmem:[#allocation5 + $0x420] sm:$0xf] }
  0xc0   :  { %922 = vmatmul.bf16.vlgmr.msra.gmra.mxu2 %v3492_v35  ;;  %v3495_v46 = vpack.c.bf16 %v322_v36, %v322_v36  ;;  %948 = vmatmul.bf16.vlgmr.msrb.gmra.mxu0 %v3492_v35  ;;  %v3025_v36 = vld [vmem:[#allocation5 + $0x44] sm:$0xf]  ;;  %v76_v17 = vld [vmem:[#allocation2 + $0x5] ss:$8 sm:$0x30] }
  0xc1   :  { %1018 = vmatpush.bf16.msra.mxu2 %v2364_v32  ;;  %1044 = vmatpush.bf16.msrb.mxu0 %v2368_v33  ;;  %v2248_v32 = vor.u32 %v3031_v23, %v2245_v24  ;;  %v2219_v33 = vld [vmem:[#allocation5 + $0x40] sm:$0xf]  ;;  %v2224_v49 = vor.u32 %v3025_v36, %v2221_v37  ;;  %v3152_v22 = vld [vmem:[#allocation5 + $0x434] sm:$0xf0]  ;;  %v3149_v23 = vld [vmem:[#allocation5 + $0x424] sm:$0xf]  ;;  %v3508_v29 = vor.u32 %v76_v17, %v75_v12 }
  0xc2   :  { %935 = vmatmul.bf16.vlgmr.msra.gmra.mxu3 %v3495_v46  ;;  %961 = vmatmul.bf16.vlgmr.msrb.gmra.mxu1 %v3495_v46  ;;  %v2220_v48 = vor.u32 %v3028_v34, %v2219_v33  ;;  %v2712_v24 = vor.u32 %v3152_v22, %v2711_v21  ;;  %v2855_v27 = vld [vmem:[#allocation5 + $0x540] sm:$0xf]  ;;  %v3188_v28 = vld [vmem:[#allocation5 + $0x554] sm:$0xf0]  ;;  %v2687_v34 = vld [vmem:[#allocation5 + $0x3f0] sm:$0xf] }
  0xc3   :  { %1031 = vmatpush.bf16.msra.mxu3 %v2556_v40  ;;  %1057 = vmatpush.bf16.msrb.mxu1 %v2560_v43  ;;  %v2411_v40 = vld [vmem:[#allocation5 + $0x1c0] sm:$0xf]  ;;  %v3076_v43 = vld [vmem:[#allocation5 + $0x1d4] sm:$0xf0]  ;;  %v2856_v30 = vor.u32 %v3188_v28, %v2855_v27  ;;  %v3146_v36 = vld [vmem:[#allocation5 + $0x404] sm:$0xf0] }
  0xc4   :  { %v2412_v53 = vor.u32 %v3076_v43, %v2411_v40  ;;  %v3143_v37 = vld [vmem:[#allocation5 + $0x3f4] sm:$0xf]  ;;  %v2831_v43 = vld [vmem:[#allocation5 + $0x510] sm:$0xf]  ;;  %v3140_v52 = vld [vmem:[#allocation5 + $0x3d4] sm:$0xf0] }
  0xc5   :  { %1019 = vmatpush.bf16.msra.mxu2 %v2340_v50  ;;  %1045 = vmatpush.bf16.msrb.mxu0 %v2344_v45  ;;  %v2195_v50 = vld [vmem:[#allocation5 + $0x10] sm:$0xf]  ;;  %v3022_v45 = vld [vmem:[#allocation5 + $0x24] sm:$0xf0]  ;;  %v3131_v5 = vld [vmem:[#allocation5 + $0x394] sm:$0xf] }
  0xc6   :  { %v2196_v42 = vor.u32 %v3022_v45, %v2195_v50  ;;  %v2833_v50 = vld [vmem:[#allocation5 + $0x528] sm:$0xf0]  ;;  %v3125_v17 = vld [vmem:[#allocation5 + $0x364] sm:$0xf]  ;;  %v2759_v21 = vld [vmem:[#allocation5 + $0x480] sm:$0xf] }
  0xc7   :  { %1032 = vmatpush.bf16.msra.mxu3 %v2532_v54  ;;  %1058 = vmatpush.bf16.msrb.mxu1 %v2536_v55  ;;  %v2387_v54 = vld [vmem:[#allocation5 + $0x190] sm:$0xf]  ;;  %v3070_v55 = vld [vmem:[#allocation5 + $0x1a4] sm:$0xf0]  ;;  %v2836_v45 = vor.u32 %v3179_v47, %v2833_v50  ;;  %v3164_v22 = vld [vmem:[#allocation5 + $0x494] sm:$0xf0] }
  0xc8   :  { %v2761_v27 = vld [vmem:[#allocation5 + $0x498] sm:$0xf0]  ;;  %v2935_v28 = vld [vmem:[#allocation5 + $0x5d8] sm:$0xf]  ;;  %v2911_v50 = vld [vmem:[#allocation5 + $0x5a8] sm:$0xf] }
  0xc9   :  { %1020 = vmatpush.bf16.msra.mxu2 %v2316_v59  ;;  %1046 = vmatpush.bf16.msrb.mxu0 %v2320_v60  ;;  %v2388_v59 = vor.u32 %v3070_v55, %v2387_v54  ;;  %v2392_v60 = vor.u32 %v3067_v56, %v2389_v57  ;;  %v2665_v54 = vld [vmem:[#allocation5 + $0x3d8] sm:$0xf0]  ;;  %v2807_v56 = vld [vmem:[#allocation5 + $0x4e0] sm:$0xf]  ;;  %v3176_v57 = vld [vmem:[#allocation5 + $0x4f4] sm:$0xf0] }
  0xcb   :  { %1033 = vmatpush.bf16.msra.mxu3 %v2508_v2  ;;  %1059 = vmatpush.bf16.msrb.mxu1 %v2512_v3  ;;  %v2929_v2 = vld [vmem:[#allocation5 + $0x5e8] sm:$0xf0] }
  0xcc   :  { %v2932_v3 = vor.u32 %v3203_v0, %v2929_v2  ;;  %v2639_v0 = vld [vmem:[#allocation5 + $0x390] sm:$0xf] }
  0xcd   :  { %1021 = vmatpush.bf16.msra.mxu2 %v2292_v7  ;;  %1047 = vmatpush.bf16.msrb.mxu0 %v2296_v8  ;;  %v2905_v7 = vld [vmem:[#allocation5 + $0x5b8] sm:$0xf0] }
  0xce   :  { %v2908_v8 = vor.u32 %v3197_v63, %v2905_v7  ;;  %v2641_v63 = vld [vmem:[#allocation5 + $0x3a8] sm:$0xf0] }
  0xcf   :  { %1034 = vmatpush.bf16.msra.mxu3 %v2484_v13  ;;  %1060 = vmatpush.bf16.msrb.mxu1 %v2488_v14  ;;  %v2879_v14 = vld [vmem:[#allocation5 + $0x570] sm:$0xf]  ;;  %v2644_v7 = vor.u32 %v3131_v5, %v2641_v63  ;;  %v2887_v63 = vld [vmem:[#allocation5 + $0x578] sm:$0xf] }
  0xd0   :  { %974 = vmatmul.bf16.vlgmr.msrb.gmra.mxu2 %v3492_v35  ;;  %1000 = vmatmul.bf16.vlgmr.msra.gmra.mxu0 %v3492_v35  ;;  %v2880_v18 = vor.u32 %v3194_v15, %v2879_v14  ;;  %v3128_v14 = vld [vmem:[#allocation5 + $0x374] sm:$0xf0] }
  0xd1   :  { %1022 = vmatpush.bf16.msra.mxu2 %v2268_v19  ;;  %1048 = vmatpush.bf16.msrb.mxu0 %v2272_v20  ;;  %v2881_v19 = vld [vmem:[#allocation5 + $0x588] sm:$0xf0] }
  0xd2   :  { %987 = vmatmul.bf16.vlgmr.msrb.gmra.mxu3 %v3495_v46  ;;  %1013 = vmatmul.bf16.vlgmr.msra.gmra.mxu1 %v3495_v46  ;;  %v2884_v20 = vor.u32 %v3191_v16, %v2881_v19 }
  0xd3   :  { %1035 = vmatpush.bf16.msra.mxu3 %v2460_v25  ;;  %1061 = vmatpush.bf16.msrb.mxu1 %v2464_v26  ;;  %v2713_v25 = vld [vmem:[#allocation5 + $0x438] sm:$0xf0] }
  0xd4   :  { %v2716_v26 = vor.u32 %v3149_v23, %v2713_v25  ;;  %v2760_v25 = vor.u32 %v3164_v22, %v2759_v21  ;;  %v3186_v21 = vld [vmem:[#allocation5 + $0x54c] sm:$0xf]  ;;  %v2865_v22 = vld [vmem:[#allocation5 + $0x560] sm:$0xf0] }
  0xd5   :  { %1023 = vmatpush.bf16.msra.mxu2 %v2244_v31  ;;  %1049 = vmatpush.bf16.msrb.mxu0 %v2248_v32  ;;  %v3185_v31 = vld [vmem:[#allocation5 + $0x544] sm:$0xf]  ;;  %v2857_v32 = vld [vmem:[#allocation5 + $0x558] sm:$0xf0] }
  0xd6   :  { %v2860_v33 = vor.u32 %v3185_v31, %v2857_v32  ;;  %v3207_v32 = vld [vmem:[#allocation5 + $0x5ec] sm:$0xf0] }
  0xd7   :  { %1036 = vmatpush.bf16.msra.mxu3 %v2436_v38  ;;  %1062 = vmatpush.bf16.msrb.mxu1 %v2440_v39  ;;  %v2688_v38 = vor.u32 %v3146_v36, %v2687_v34  ;;  %v2689_v39 = vld [vmem:[#allocation5 + $0x408] sm:$0xf0]  ;;  %v2937_v34 = vld [vmem:[#allocation5 + $0x5f0] sm:$0xf0] }
  0xd8   :  { %v2692_v40 = vor.u32 %v3143_v37, %v2689_v39  ;;  %v2936_v37 = vor.u32 %v3207_v32, %v2935_v28  ;;  %v2591_v39 = vld [vmem:[#allocation5 + $0x330] sm:$0xf]  ;;  %v2697_v28 = vld [vmem:[#allocation5 + $0x410] sm:$0xf0] }
  0xd9   :  { %1024 = vmatpush.bf16.msra.mxu2 %v2220_v48  ;;  %1050 = vmatpush.bf16.msrb.mxu0 %v2224_v49  ;;  %v423_v48 = vperm.slane %v3508_v29, 1  ;;  %v2832_v49 = vor.u32 %v3182_v44, %v2831_v43  ;;  %v3119_v43 = vld [vmem:[#allocation5 + $0x334] sm:$0xf] }
  0xdb   :  { %1037 = vmatpush.bf16.msra.mxu3 %v2412_v53  ;;  %1063 = vmatpush.bf16.msrb.mxu1 %v2416_v41  ;;  %v3137_v53 = vld [vmem:[#allocation5 + $0x3c4] sm:$0xf]  ;;  %v2664_v41 = vor.u32 %v3140_v52, %v2663_v51  ;;  %v3198_v51 = vld [vmem:[#allocation5 + $0x5ac] sm:$0xf] }
  0xdc   :  { %v2668_v55 = vor.u32 %v3137_v53, %v2665_v54  ;;  %v2913_v53 = vld [vmem:[#allocation5 + $0x5c0] sm:$0xf0]  ;;  %v3116_v54 = vld [vmem:[#allocation5 + $0x314] sm:$0xf0] }
  0xdd   :  { %1025 = vmatpush.bf16.msra.mxu2 %v2196_v42  ;;  %1051 = vmatpush.bf16.msrb.mxu0 %v2200_v58  ;;  %v3173_v42 = vld [vmem:[#allocation5 + $0x4e4] sm:$0xf] }
  0xdf   :  { %1038 = vmatpush.bf16.msra.mxu3 %v2388_v59  ;;  %1064 = vmatpush.bf16.msrb.mxu1 %v2392_v60  ;;  %v2808_v59 = vor.u32 %v3176_v57, %v2807_v56  ;;  %v2809_v60 = vld [vmem:[#allocation5 + $0x4f8] sm:$0xf0]  ;;  %v2916_v56 = vor.u32 %v3198_v51, %v2913_v53  ;;  %v2815_v53 = vld [vmem:[#allocation5 + $0x4e8] sm:$0xf] }
  0xe0   :  { %1026 = vmatmul.bf16.vlgmr.msra.gmra.mxu2 %v3492_v35  ;;  %1052 = vmatmul.bf16.vlgmr.msrb.gmra.mxu0 %v3492_v35  ;;  %v3158_v35 = vld [vmem:[#allocation5 + $0x464] sm:$0xf0]  ;;  %v2812_v62 = vor.u32 %v3173_v42, %v2809_v60  ;;  %v3113_v42 = vld [vmem:[#allocation5 + $0x304] sm:$0xf] }
  0xe1   :  { %v2736_v10 = vor.u32 %v3158_v35, %v2735_v9  ;;  %v3170_v9 = vld [vmem:[#allocation5 + $0x4c4] sm:$0xf0]  ;;  %v3167_v35 = vld [vmem:[#allocation5 + $0x4b4] sm:$0xf] }
  0xe2   :  { %1039 = vmatmul.bf16.vlgmr.msra.gmra.mxu3 %v3495_v46  ;;  %1065 = vmatmul.bf16.vlgmr.msrb.gmra.mxu1 %v3495_v46  ;;  %v2737_v46 = vld [vmem:[#allocation5 + $0x468] sm:$0xf0] }
  0xe3   :  { %1759 = vmatpush.bf16.msrb.mxu3 %v2928_v1  ;;  %1785 = vmatpush.bf16.msra.mxu1 %v2932_v3  ;;  %v2740_v13 = vor.u32 %v3155_v11, %v2737_v46  ;;  %v3134_v1 = vld [vmem:[#allocation5 + $0x3a4] sm:$0xf0]  ;;  %v422_v3 = vperm.slane %v3508_v29, 0  ;;  %v2785_v11 = vld [vmem:[#allocation5 + $0x4c8] sm:$0xf0] }
  0xe4   :  { %1746 = vmatpush.bf16.msrb.mxu2 %v2736_v10  ;;  %v2640_v4 = vor.u32 %v3134_v1, %v2639_v0  ;;  %v2788_v12 = vor.u32 %v3167_v35, %v2785_v11  ;;  %v3156_v0 = vld [vmem:[#allocation5 + $0x45c] sm:$0xf]  ;;  %v2719_v11 = vld [vmem:[#allocation5 + $0x428] sm:$0xf] }
  0xe5   :  { %1772 = vmatpush.bf16.msra.mxu0 %v2740_v13  ;;  %v2615_v13 = vld [vmem:[#allocation5 + $0x360] sm:$0xf] }
  0xe6   :  { %v2616_v16 = vor.u32 %v3128_v14, %v2615_v13  ;;  %v3150_v13 = vld [vmem:[#allocation5 + $0x42c] sm:$0xf]  ;;  %v2721_v14 = vld [vmem:[#allocation5 + $0x440] sm:$0xf0] }
  0xe7   :  { %1760 = vmatpush.bf16.msrb.mxu3 %v2904_v6  ;;  %1786 = vmatpush.bf16.msra.mxu1 %v2908_v8  ;;  %v2783_v8 = vld [vmem:[#allocation5 + $0x4b0] sm:$0xf] }
  0xe8   :  { %1747 = vmatpush.bf16.msrb.mxu2 %v2712_v24  ;;  %v2784_v10 = vor.u32 %v3170_v9, %v2783_v8 }
  0xe9   :  { %1773 = vmatpush.bf16.msra.mxu0 %v2716_v26  ;;  %v3161_v26 = vld [vmem:[#allocation5 + $0x484] sm:$0xf] }
  0xea   :  { %v2764_v31 = vor.u32 %v3161_v26, %v2761_v27  ;;  %v3147_v26 = vld [vmem:[#allocation5 + $0x40c] sm:$0xf0]  ;;  %v3144_v27 = vld [vmem:[#allocation5 + $0x3fc] sm:$0xf] }
  0xeb   :  { %1761 = vmatpush.bf16.msrb.mxu3 %v2880_v18  ;;  %1787 = vmatpush.bf16.msra.mxu1 %v2884_v20  ;;  %v2617_v18 = vld [vmem:[#allocation5 + $0x378] sm:$0xf0] }
  0xec   :  { %1748 = vmatpush.bf16.msrb.mxu2 %v2688_v38  ;;  %v2620_v20 = vor.u32 %v3125_v17, %v2617_v18  ;;  %v2863_v17 = vld [vmem:[#allocation5 + $0x548] sm:$0xf]  ;;  %v3189_v18 = vld [vmem:[#allocation5 + $0x55c] sm:$0xf0] }
  0xed   :  { %1774 = vmatpush.bf16.msra.mxu0 %v2692_v40  ;;  %v3122_v40 = vld [vmem:[#allocation5 + $0x344] sm:$0xf0] }
  0xee   :  { %v2592_v47 = vor.u32 %v3122_v40, %v2591_v39  ;;  %v3180_v39 = vld [vmem:[#allocation5 + $0x51c] sm:$0xf]  ;;  %v2841_v40 = vld [vmem:[#allocation5 + $0x530] sm:$0xf0] }
  0xef   :  { %1762 = vmatpush.bf16.msrb.mxu3 %v2856_v30  ;;  %1788 = vmatpush.bf16.msra.mxu1 %v2860_v33  ;;  %v3204_v33 = vld [vmem:[#allocation5 + $0x5dc] sm:$0xf] }
  0xf0   :  { %1749 = vmatpush.bf16.msrb.mxu2 %v2664_v41  ;;  %v2940_v38 = vor.u32 %v3204_v33, %v2937_v34  ;;  %v2567_v41 = vld [vmem:[#allocation5 + $0x300] sm:$0xf]  ;;  %v2700_v34 = vor.u32 %v3144_v27, %v2697_v28  ;;  %v3162_v27 = vld [vmem:[#allocation5 + $0x48c] sm:$0xf] }
  0xf1   :  { %1775 = vmatpush.bf16.msra.mxu0 %v2668_v55  ;;  %v2568_v57 = vor.u32 %v3116_v54, %v2567_v41  ;;  %v3177_v41 = vld [vmem:[#allocation5 + $0x4fc] sm:$0xf0]  ;;  %v3174_v54 = vld [vmem:[#allocation5 + $0x4ec] sm:$0xf] }
  0xf3   :  { %1763 = vmatpush.bf16.msrb.mxu3 %v2832_v49  ;;  %1789 = vmatpush.bf16.msra.mxu1 %v2836_v45  ;;  %v3201_v45 = vld [vmem:[#allocation5 + $0x5bc] sm:$0xf0] }
  0xf4   :  { %1750 = vmatpush.bf16.msrb.mxu2 %v2640_v4  ;;  %v2912_v52 = vor.u32 %v3201_v45, %v2911_v50  ;;  %v2673_v45 = vld [vmem:[#allocation5 + $0x3e0] sm:$0xf0] }
  0xf5   :  { %1776 = vmatpush.bf16.msra.mxu0 %v2644_v7  ;;  %v3192_v7 = vld [vmem:[#allocation5 + $0x57c] sm:$0xf] }
  0xf7   :  { %1764 = vmatpush.bf16.msrb.mxu3 %v2808_v59  ;;  %1790 = vmatpush.bf16.msra.mxu1 %v2812_v62  ;;  %v3159_v62 = vld [vmem:[#allocation5 + $0x46c] sm:$0xf0] }
  0xf8   :  { %1751 = vmatpush.bf16.msrb.mxu2 %v2616_v16  ;;  %v2724_v16 = vor.u32 %v3150_v13, %v2721_v14 }
  0xf9   :  { %1777 = vmatpush.bf16.msra.mxu0 %v2620_v20  ;;  %v2864_v20 = vor.u32 %v3189_v18, %v2863_v17  ;;  %v3126_v17 = vld [vmem:[#allocation5 + $0x36c] sm:$0xf] }
  0xfb   :  { %1765 = vmatpush.bf16.msrb.mxu3 %v2784_v10  ;;  %1791 = vmatpush.bf16.msra.mxu1 %v2788_v12  ;;  %v2889_v10 = vld [vmem:[#allocation5 + $0x590] sm:$0xf0]  ;;  %v3153_v12 = vld [vmem:[#allocation5 + $0x43c] sm:$0xf0] }
  0xfc   :  { %1752 = vmatpush.bf16.msrb.mxu2 %v2592_v47  ;;  %v2671_v47 = vld [vmem:[#allocation5 + $0x3c8] sm:$0xf] }
  0xff   :  { %1766 = vmatpush.bf16.msrb.mxu3 %v2760_v25  ;;  %1792 = vmatpush.bf16.msra.mxu1 %v2764_v31  ;;  %v2868_v25 = vor.u32 %v3186_v21, %v2865_v22  ;;  %v2625_v22 = vld [vmem:[#allocation5 + $0x380] sm:$0xf0] }
 0x100   :  { %1753 = vmatpush.bf16.msrb.mxu2 %v2568_v57  ;;  %v2817_v57 = vld [vmem:[#allocation5 + $0x500] sm:$0xf0] }
 0x103   :  { %1811 = vmatpush.bf16.msra.mxu3 %v2936_v37  ;;  %1837 = vmatpush.bf16.msrb.mxu1 %v2940_v38  ;;  %v3183_v37 = vld [vmem:[#allocation5 + $0x52c] sm:$0xf0] }
 0x107   :  { %1812 = vmatpush.bf16.msra.mxu3 %v2912_v52  ;;  %1838 = vmatpush.bf16.msrb.mxu1 %v2916_v56  ;;  %v2816_v56 = vor.u32 %v3177_v41, %v2815_v53  ;;  %v424_v53 = vperm.slane %v3508_v29, 2 }
 0x13d   :  { %v949_v58 = vpop.f32.mrf.mxu0 }
 0x13e   :  { %v950_v61 = vadd.f32 %v949_v58, %v423_v48  ;;  %v2593_v48 = vld [vmem:[#allocation5 + $0x348] sm:$0xf0]  ;;  %v2569_v58 = vld [vmem:[#allocation5 + $0x318] sm:$0xf0] }
 0x13f   :  { %v962_v2 = vpop.f32.mrf.mxu1  ;;  %v2596_v49 = vor.u32 %v3119_v43, %v2593_v48  ;;  %v2572_v60 = vor.u32 %v3113_v42, %v2569_v58  ;;  %v3141_v48 = vld [vmem:[#allocation5 + $0x3dc] sm:$0xf0]  ;;  %v2820_v58 = vor.u32 %v3174_v54, %v2817_v57  ;;  %v3114_v57 = vld [vmem:[#allocation5 + $0x30c] sm:$0xf] }
 0x140   :  { %v963_v6 = vadd.f32 %v962_v2, %v950_v61  ;;  %v2743_v61 = vld [vmem:[#allocation5 + $0x458] sm:$0xf]  ;;  %v2672_v50 = vor.u32 %v3141_v48, %v2671_v47 }
 0x141   :  { %1778 = vmatpush.bf16.msra.mxu0 %v2596_v49  ;;  %v2744_v4 = vor.u32 %v3159_v62, %v2743_v61  ;;  %v3138_v49 = vld [vmem:[#allocation5 + $0x3cc] sm:$0xf] }
 0x142   :  { %v2562_v46 = vmul.f32 -1.442695, %v963_v6  ;;  %v3195_v6 = vld [vmem:[#allocation5 + $0x58c] sm:$0xf0]  ;;  %v2676_v52 = vor.u32 %v3138_v49, %v2673_v45  ;;  %v2601_v45 = vld [vmem:[#allocation5 + $0x350] sm:$0xf0] }
 0x143   :  { %v923_v15 = vpop.f32.mrf.mxu2  ;;  %v2888_v35 = vor.u32 %v3195_v6, %v2887_v63  ;;  %1798 = vmatpush.bf16.msra.mxu2 %v2744_v4  ;;  %v2791_v63 = vld [vmem:[#allocation5 + $0x4b8] sm:$0xf]  ;;  %v3171_v6 = vld [vmem:[#allocation5 + $0x4cc] sm:$0xf0] }
 0x144   :  { %v924_v19 = vadd.f32 %v923_v15, %v422_v3  ;;  %3257 = vpow2.f32 %v2562_v46  ;;  %v2745_v3 = vld [vmem:[#allocation5 + $0x470] sm:$0xf0]  ;;  %v2892_v46 = vor.u32 %v3192_v7, %v2889_v10  ;;  %v2720_v15 = vor.u32 %v3153_v12, %v2719_v11  ;;  %v3168_v7 = vld [vmem:[#allocation5 + $0x4bc] sm:$0xf] }
 0x145   :  { %v936_v23 = vpop.f32.mrf.mxu3  ;;  %v951_v24 = vpop.f32.mrf.mxu0  ;;  %v2748_v5 = vor.u32 %v3156_v0, %v2745_v3  ;;  %1779 = vmatpush.bf16.msra.mxu0 %v2572_v60  ;;  %1813 = vmatpush.bf16.msra.mxu3 %v2888_v35  ;;  %v3135_v60 = vld [vmem:[#allocation5 + $0x3ac] sm:$0xf0]  ;;  %v3132_v0 = vld [vmem:[#allocation5 + $0x39c] sm:$0xf]  ;;  %v425_v35 = vperm.slane %v3508_v29, 3  ;;  %v2792_v11 = vor.u32 %v3171_v6, %v2791_v63 }
 0x146   :  { %v937_v30 = vadd.f32 %v936_v23, %v924_v19  ;;  %1839 = vmatpush.bf16.msrb.mxu1 %v2892_v46  ;;  %v2695_v24 = vld [vmem:[#allocation5 + $0x3f8] sm:$0xf]  ;;  %v2793_v46 = vld [vmem:[#allocation5 + $0x4d0] sm:$0xf0] }
 0x147   :  { %v964_v36 = vpop.f32.mrf.mxu1  ;;  %1799 = vmatpush.bf16.msra.mxu2 %v2720_v15  ;;  %v2696_v33 = vor.u32 %v3147_v26, %v2695_v24  ;;  %v2796_v14 = vor.u32 %v3168_v7, %v2793_v46  ;;  %v2623_v15 = vld [vmem:[#allocation5 + $0x368] sm:$0xf]  ;;  %v2628_v24 = vor.u32 %v3126_v17, %v2625_v22  ;;  %v3165_v26 = vld [vmem:[#allocation5 + $0x49c] sm:$0xf0] }
 0x148   :  { %v2561_v44 = vmul.f32 -1.442695, %v937_v30  ;;  %v2839_v36 = vld [vmem:[#allocation5 + $0x518] sm:$0xf] }
 0x149   :  { %1824 = vmatpush.bf16.msrb.mxu0 %v2748_v5  ;;  %1814 = vmatpush.bf16.msra.mxu3 %v2864_v20  ;;  %v2840_v38 = vor.u32 %v3183_v37, %v2839_v36  ;;  %v426_v20 = vperm.slane %v3508_v29, 4 }
 0x14a   :  { %v3258_v59 = vpop.eup %3257  ;;  %3259 = vpow2.f32 %v2561_v44  ;;  %1840 = vmatpush.bf16.msrb.mxu1 %v2868_v25  ;;  %v2844_v44 = vor.u32 %v3180_v39, %v2841_v40  ;;  %v2767_v25 = vld [vmem:[#allocation5 + $0x488] sm:$0xf]  ;;  %v2599_v40 = vld [vmem:[#allocation5 + $0x338] sm:$0xf] }
 0x14b   :  { %v925_v55 = vpop.f32.mrf.mxu2  ;;  %v3514_v8 = vadd.f32 1.0, %v3258_v59  ;;  %1800 = vmatpush.bf16.msra.mxu2 %v2696_v33  ;;  %v2647_v59 = vld [vmem:[#allocation5 + $0x398] sm:$0xf]  ;;  %v2768_v33 = vor.u32 %v3165_v26, %v2767_v25 }
 0x14c   :  { %v427_v55 = vperm.slane %v3508_v29, 5  ;;  %v2648_v62 = vor.u32 %v3135_v60, %v2647_v59  ;;  %v2577_v60 = vld [vmem:[#allocation5 + $0x320] sm:$0xf0] }
 0x14d   :  { %v938_v1 = vpop.f32.mrf.mxu3  ;;  %v3512_v2 = vpop.f32.mrf.mxu0  ;;  %3261 = vrcp.f32 %v3514_v8  ;;  %1825 = vmatpush.bf16.msrb.mxu0 %v2724_v16  ;;  %1815 = vmatpush.bf16.msra.mxu3 %v2840_v38  ;;  %v3129_v16 = vld [vmem:[#allocation5 + $0x37c] sm:$0xf0]  ;;  %vm1098_vm3 = vweird.f32 %v3514_v8 }
 0x14e   :  { %1841 = vmatpush.bf16.msrb.mxu1 %v2844_v44  ;;  %v2649_v1 = vld [vmem:[#allocation5 + $0x3b0] sm:$0xf0]  ;;  %v2624_v21 = vor.u32 %v3129_v16, %v2623_v15  ;;  %v1002_v38 = vadd.f32 %v3512_v2, %v425_v35  ;;  %v3120_v44 = vld [vmem:[#allocation5 + $0x33c] sm:$0xf] }
 0x14f   :  { %v3516_v9 = vpop.f32.mrf.mxu1  ;;  %1801 = vmatpush.bf16.msra.mxu2 %v2672_v50  ;;  %v2652_v5 = vor.u32 %v3132_v0, %v2649_v1  ;;  %v2604_v2 = vor.u32 %v3120_v44, %v2601_v45  ;;  %v1104_v0 = vand.u32 2147483648, %v3514_v8 }
 0x150   :  { %v3260_v19 = vpop.eup %3259 }
 0x151   :  { %v3521_v30 = vadd.f32 1.0, %v3260_v19  ;;  %1826 = vmatpush.bf16.msrb.mxu0 %v2700_v34  ;;  %1816 = vmatpush.bf16.msra.mxu3 %v2816_v56  ;;  %v2769_v34 = vld [vmem:[#allocation5 + $0x4a0] sm:$0xf0]  ;;  %v3117_v56 = vld [vmem:[#allocation5 + $0x31c] sm:$0xf0]  ;;  %v1105_v7 = vor.u32 1.1754944e-38, %v1104_v0 }
 0x152   :  { %1842 = vmatpush.bf16.msrb.mxu1 %v2820_v58  ;;  %v2772_v37 = vor.u32 %v3162_v27, %v2769_v34 }
 0x153   :  { %v3519_v23 = vpop.f32.mrf.mxu2  ;;  %v3525_v51 = vpop.eup %3261  ;;  %3263 = vrcp.f32 %v3521_v30  ;;  %1802 = vmatpush.bf16.msra.mxu2 %v2648_v62  ;;  %v2580_v62 = vor.u32 %v3114_v57, %v2577_v60  ;;  %vm1083_vm7 = vweird.f32 %v3521_v30  ;;  %v1087_v46 = vand.u32 2147483647, %v3521_v30 }
 0x154   :  { %v1094_v61 = vmul.f32 %v3525_v51, %v3514_v8  ;;  %vm1099_vm2 = vweird.f32 %v3525_v51  ;;  %v976_v1 = vadd.f32 %v3519_v23, %v424_v53  ;;  %v3202_v53 = vld [vmem:[#allocation5 + $0x5c4] sm:$0xf0] }
 0x155   :  { %v3523_v31 = vpop.f32.mrf.mxu3  ;;  %v1003_v32 = vpop.f32.mrf.mxu0  ;;  %1827 = vmatpush.bf16.msrb.mxu0 %v2676_v52  ;;  %1817 = vmatpush.bf16.msra.mxu3 %v2792_v11  ;;  %vm1100_vm4 = vmor %vm1098_vm3, %vm1099_vm2  ;;  %v1089_v11 = vand.u32 2147483648, %v3521_v30  ;;  %vm1088_vm9 = vcmp.eq.f32.partialorder %v1087_v46, 8.507059e+37  ;;  %v3190_v46 = vld [vmem:[#allocation5 + $0x564] sm:$0xf0] }
 0x156   :  { %v1095_v18 = vsub.f32 1.0, %v1094_v61  ;;  %1843 = vmatpush.bf16.msrb.mxu1 %v2796_v14  ;;  %v989_v23 = vadd.f32 %v3523_v31, %v976_v1  ;;  %v3196_v1 = vld [vmem:[#allocation5 + $0x594] sm:$0xf0] }
 0x157   :  { %v1016_v43 = vpop.f32.mrf.mxu1  ;;  %1803 = vmatpush.bf16.msra.mxu2 %v2624_v21  ;;  %v1090_v16 = vor.u32 1.1754944e-38, %v1089_v11  ;;  %v2871_v11 = vld [vmem:[#allocation5 + $0x550] sm:$0xf] }
 0x158   :  { %v3123_v43 = vld [vmem:[#allocation5 + $0x34c] sm:$0xf0]  ;;  %v1096_v47 = vmul.f32 %v3525_v51, %v1095_v18 }
 0x159   :  { %v3532_v12 = vpop.eup %3263  ;;  %1828 = vmatpush.bf16.msrb.mxu0 %v2652_v5  ;;  %1818 = vmatpush.bf16.msra.mxu3 %v2768_v33  ;;  %v2600_v50 = vor.u32 %v3123_v43, %v2599_v40 }
 0x15a   :  { %v1079_v28 = vmul.f32 %v3532_v12, %v3521_v30  ;;  %1844 = vmatpush.bf16.msrb.mxu1 %v2772_v37  ;;  %v1097_v61 = vadd.f32 %v3525_v51, %v1096_v47  ;;  %vm1084_vm6 = vweird.f32 %v3532_v12  ;;  %v2945_v37 = vld [vmem:[#allocation5 + $0x5f8] sm:$0xf0] }
 0x15b   :  { %v977_v42 = vpop.f32.mrf.mxu2  ;;  %1804 = vmatpush.bf16.msra.mxu2 %v2600_v50  ;;  %vm1085_vm8 = vmor %vm1083_vm7, %vm1084_vm6  ;;  %v2919_v50 = vld [vmem:[#allocation5 + $0x5b0] sm:$0xf] }
 0x15c   :  { %v1080_v52 = vsub.f32 1.0, %v1079_v28  ;;  %v1015_v42 = vadd.f32 %v3516_v9, %v1002_v38  ;;  %v1102_v9 = vand.u32 2147483647, %v3514_v8  ;;  %v1101_v63 = vsel %vm1100_vm4, %v3525_v51, %v1097_v61 }
 0x15d   :  { %v990_v3 = vpop.f32.mrf.mxu3  ;;  %v1053_v4 = vpop.f32.mrf.mxu0  ;;  %1829 = vmatpush.bf16.msrb.mxu0 %v2628_v24  ;;  %v2920_v61 = vor.u32 %v3202_v53, %v2919_v50  ;;  %v2799_v53 = vld [vmem:[#allocation5 + $0x4c0] sm:$0xf] }
 0x15e   :  { %v1054_v10 = vadd.f32 %v1053_v4, %v427_v55  ;;  %v2575_v55 = vld [vmem:[#allocation5 + $0x308] sm:$0xf]  ;;  %v1081_v3 = vmul.f32 %v3532_v12, %v1080_v52  ;;  %vm1103_vm5 = vcmp.eq.f32.partialorder %v1102_v9, 8.507059e+37  ;;  %v3193_v9 = vld [vmem:[#allocation5 + $0x584] sm:$0xf] }
 0x15f   :  { %v1066_v13 = vpop.f32.mrf.mxu1  ;;  %v2576_v59 = vor.u32 %v3117_v56, %v2575_v55  ;;  %v2751_v55 = vld [vmem:[#allocation5 + $0x460] sm:$0xf]  ;;  %v3160_v56 = vld [vmem:[#allocation5 + $0x474] sm:$0xf0] }
 0x160   :  { %v1067_v19 = vadd.f32 %v1066_v13, %v1054_v10  ;;  %v1082_v35 = vadd.f32 %v3532_v12, %v1081_v3  ;;  %v1106_v10 = vsel %vm1103_vm5, %v1105_v7, %v1101_v63  ;;  %v2897_v3 = vld [vmem:[#allocation5 + $0x598] sm:$0xf0]  ;;  %v2727_v63 = vld [vmem:[#allocation5 + $0x430] sm:$0xf]  ;;  %v3154_v7 = vld [vmem:[#allocation5 + $0x444] sm:$0xf0] }
 0x161   :  { %1830 = vmatpush.bf16.msrb.mxu0 %v2604_v2  ;;  %1805 = vmatpush.bf16.msra.mxu2 %v2576_v59  ;;  %v2921_v2 = vld [vmem:[#allocation5 + $0x5c8] sm:$0xf0] }
 0x162   :  { %v2564_v32 = vmul.f32 -1.442695, %v1067_v19  ;;  %v1086_v31 = vsel %vm1085_vm8, %v3532_v12, %v1082_v35  ;;  %v2943_v12 = vld [vmem:[#allocation5 + $0x5e0] sm:$0xf]  ;;  %v2729_v35 = vld [vmem:[#allocation5 + $0x448] sm:$0xf0] }
 0x163   :  { %v1027_v36 = vpop.f32.mrf.mxu2  ;;  %v1091_v18 = vsel %vm1088_vm9, %v1090_v16, %v1086_v31  ;;  %v2703_v31 = vld [vmem:[#allocation5 + $0x400] sm:$0xf]  ;;  %v3148_v16 = vld [vmem:[#allocation5 + $0x414] sm:$0xf0] }
 0x164   :  { %3265 = vpow2.f32 %v2564_v32  ;;  %v1028_v39 = vadd.f32 %v1027_v36, %v426_v20  ;;  %v3208_v32 = vld [vmem:[#allocation5 + $0x5f4] sm:$0xf0]  ;;  %v3205_v36 = vld [vmem:[#allocation5 + $0x5e4] sm:$0xf] }
 0x165   :  { %v1040_v48 = vpop.f32.mrf.mxu3  ;;  %v1055_v49 = vpop.f32.mrf.mxu0  ;;  %1831 = vmatpush.bf16.msrb.mxu0 %v2580_v62 }
 0x166   :  { %v1041_v41 = vadd.f32 %v1040_v48, %v1028_v39  ;;  %v2944_v48 = vor.u32 %v3208_v32, %v2943_v12  ;;  %v2948_v49 = vor.u32 %v3205_v36, %v2945_v37  ;;  %v3139_v12 = vld [vmem:[#allocation5 + $0x3d4] sm:$0xf]  ;;  %v2681_v32 = vld [vmem:[#allocation5 + $0x3e8] sm:$0xf0]  ;;  %v2823_v36 = vld [vmem:[#allocation5 + $0x4f0] sm:$0xf] }
 0x167   :  { %v1068_v54 = vpop.f32.mrf.mxu1  ;;  %v3178_v37 = vld [vmem:[#allocation5 + $0x504] sm:$0xf0] }
 0x168   :  { %v2563_v58 = vmul.f32 -1.442695, %v1041_v41  ;;  %v3199_v41 = vld [vmem:[#allocation5 + $0x5b4] sm:$0xf]  ;;  %v2824_v50 = vor.u32 %v3178_v37, %v2823_v36  ;;  %v3216_v37 = vld [vmem:[#allocation7 + $0x38] sm:$0xff] }
 0x169   :  { %v2924_v62 = vor.u32 %v3199_v41, %v2921_v2  ;;  %v3172_v41 = vld [vmem:[#allocation5 + $0x4d4] sm:$0xf0]  ;;  %v3169_v2 = vld [vmem:[#allocation5 + $0x4c4] sm:$0xf] }
 0x16a   :  { %v3266_v29 = vpop.eup %3265  ;;  %3267 = vpow2.f32 %v2563_v58  ;;  %v2753_v58 = vld [vmem:[#allocation5 + $0x478] sm:$0xf0] }
 0x16b   :  { %v1117_v4 = vadd.f32 1.0, %v3266_v29  ;;  %v1029_v5 = vpop.f32.mrf.mxu2  ;;  %3269 = vtanh.f32 %v1015_v42  ;;  %v3157_v42 = vld [vmem:[#allocation5 + $0x464] sm:$0xf]  ;;  %v2895_v29 = vld [vmem:[#allocation5 + $0x580] sm:$0xf] }
 0x16c   :  { %v2756_v5 = vor.u32 %v3157_v42, %v2753_v58  ;;  %v3130_v42 = vld [vmem:[#allocation5 + $0x384] sm:$0xf0]  ;;  %v3127_v58 = vld [vmem:[#allocation5 + $0x374] sm:$0xf] }
 0x16d   :  { %3271 = vrcp.f32 %v1117_v4  ;;  %v1042_v6 = vpop.f32.mrf.mxu3  ;;  %v1144_v20 = vand.u32 2147483648, %v1117_v4  ;;  %v1142_v30 = vand.u32 2147483647, %v1117_v4  ;;  %vm1138_vm11 = vweird.f32 %v1117_v4 }
 0x16e   :  { %3273 = vtanh.f32 %v989_v23  ;;  %v3151_v23 = vld [vmem:[#allocation5 + $0x434] sm:$0xf] }
 0x16f   :  { %v1145_v28 = vor.u32 1.1754944e-38, %v1144_v20  ;;  %vm1143_vm13 = vcmp.eq.f32.partialorder %v1142_v30, 8.507059e+37  ;;  %v3181_v30 = vld [vmem:[#allocation5 + $0x524] sm:$0xf] }
 0x170   :  { %v3268_v8 = vpop.eup %3267 }
 0x171   :  { %v1116_v13 = vadd.f32 1.0, %v3268_v8  ;;  %v3270_v51 = vpop.eup %3269  ;;  %v2896_v8 = vor.u32 %v3196_v1, %v2895_v29  ;;  %v3166_v29 = vld [vmem:[#allocation5 + $0x4a4] sm:$0xf0]  ;;  %v2777_v1 = vld [vmem:[#allocation5 + $0x4a8] sm:$0xf0] }
 0x172   :  { %v1149_v15 = vmul.f32 %v3270_v51, %v1106_v10  ;;  %v2900_v10 = vor.u32 %v3193_v9, %v2897_v3  ;;  %v2873_v51 = vld [vmem:[#allocation5 + $0x568] sm:$0xf0] }
 0x173   :  { %v3272_v14 = vpop.eup %3271  ;;  %3275 = vrcp.f32 %v1116_v13  ;;  %v1129_v40 = vand.u32 2147483648, %v1116_v13  ;;  %v1127_v44 = vand.u32 2147483647, %v1116_v13  ;;  %vm1123_vm15 = vweird.f32 %v1116_v13 }
 0x174   :  { %v1134_v17 = vmul.f32 %v3272_v14, %v1117_v4  ;;  %3277 = vtanh.f32 %v1149_v15  ;;  %v3274_v21 = vpop.eup %3273  ;;  %vm1139_vm10 = vweird.f32 %v3272_v14  ;;  %v2752_v4 = vor.u32 %v3160_v56, %v2751_v55 }
 0x175   :  { %v1148_v25 = vmul.f32 %v3274_v21, %v1091_v18  ;;  %vm1140_vm12 = vmor %vm1138_vm11, %vm1139_vm10  ;;  %v1130_v54 = vor.u32 1.1754944e-38, %v1129_v40  ;;  %vm1128_vm1 = vcmp.eq.f32.partialorder %v1127_v44, 8.507059e+37  ;;  %v2732_v15 = vor.u32 %v3151_v23, %v2729_v35  ;;  %v2705_v18 = vld [vmem:[#allocation5 + $0x418] sm:$0xf0]  ;;  %v2847_v21 = vld [vmem:[#allocation5 + $0x520] sm:$0xf] }
 0x176   :  { %v1135_v19 = vsub.f32 1.0, %v1134_v17  ;;  %v3145_v17 = vld [vmem:[#allocation5 + $0x404] sm:$0xf]  ;;  %v2655_v44 = vld [vmem:[#allocation5 + $0x3a0] sm:$0xf] }
 0x177   :  { %3279 = vtanh.f32 %v1148_v25  ;;  %v2704_v25 = vor.u32 %v3148_v16, %v2703_v31  ;;  %v79_v31 = vld [vmem:[#allocation2 + $0x6] ss:$8 sm:$0xf] }
 0x178   :  { %v1136_v22 = vmul.f32 %v3272_v14, %v1135_v19  ;;  %v2872_v19 = vor.u32 %v3190_v46, %v2871_v11  ;;  %v2583_v11 = vld [vmem:[#allocation5 + $0x310] sm:$0xf]  ;;  %v3118_v46 = vld [vmem:[#allocation5 + $0x324] sm:$0xf0] }
 0x179   :  { %v3276_v24 = vpop.eup %3275  ;;  %v80_v16 = vld [vmem:[#allocation2 + $0x6] ss:$8 sm:$0x30] }
 0x17a   :  { %v1137_v26 = vadd.f32 %v3272_v14, %v1136_v22  ;;  %v1119_v27 = vmul.f32 %v3276_v24, %v1116_v13  ;;  %v3278_v38 = vpop.eup %3277  ;;  %vm1124_vm14 = vweird.f32 %v3276_v24  ;;  %v3187_v13 = vld [vmem:[#allocation5 + $0x554] sm:$0xf]  ;;  %v3184_v22 = vld [vmem:[#allocation5 + $0x534] sm:$0xf0] }
 0x17b   :  { %vm1125_vm0 = vmor %vm1123_vm15, %vm1124_vm14  ;;  %v2876_v20 = vor.u32 %v3187_v13, %v2873_v51  ;;  %v3115_v13 = vld [vmem:[#allocation5 + $0x314] sm:$0xf]  ;;  %v2585_v51 = vld [vmem:[#allocation5 + $0x328] sm:$0xf0] }
 0x17c   :  { %v1141_v33 = vsel %vm1140_vm12, %v3272_v14, %v1137_v26  ;;  %v1120_v34 = vsub.f32 1.0, %v1119_v27  ;;  %v2728_v14 = vor.u32 %v3154_v7, %v2727_v63  ;;  %v2708_v26 = vor.u32 %v3145_v17, %v2705_v18  ;;  %v2679_v27 = vld [vmem:[#allocation5 + $0x3d0] sm:$0xf]  ;;  %v3121_v63 = vld [vmem:[#allocation5 + $0x344] sm:$0xf] }
 0x17d   :  { %v1146_v39 = vsel %vm1143_vm13, %v1145_v28, %v1141_v33  ;;  %v3280_v59 = vpop.eup %3279  ;;  %v3142_v28 = vld [vmem:[#allocation5 + $0x3e4] sm:$0xf0]  ;;  %v2848_v33 = vor.u32 %v3184_v22, %v2847_v21  ;;  %v2609_v7 = vld [vmem:[#allocation5 + $0x358] sm:$0xf0]  ;;  %v3572_v17 = vor.u32 %v80_v16, %v79_v31 }
 0x17e   :  { %v1121_v43 = vmul.f32 %v3276_v24, %v1120_v34  ;;  %v1153_v47 = vmul.f32 %v3278_v38, %v1146_v39  ;;  %v3175_v38 = vld [vmem:[#allocation5 + $0x4f4] sm:$0xf]  ;;  %v2825_v39 = vld [vmem:[#allocation5 + $0x508] sm:$0xf0]  ;;  %v2680_v40 = vor.u32 %v3142_v28, %v2679_v27  ;;  %v3224_v27 = vld [vmem:[#allocation7 + $0x78] sm:$0xff] }
 0x180   :  { %v1122_v45 = vadd.f32 %v3276_v24, %v1121_v43  ;;  %v3556_v52 = vpack.c.bf16 %v1153_v47, %v1153_v47  ;;  %v2684_v43 = vor.u32 %v3139_v12, %v2681_v32  ;;  %v3136_v47 = vld [vmem:[#allocation5 + $0x3b4] sm:$0xf0] }
 0x181   :  { %v2656_v55 = vor.u32 %v3136_v47, %v2655_v44  ;;  %v3215_v47 = vld [vmem:[#allocation7 + $0x30] sm:$0xff] }
 0x182   :  { %v1126_v57 = vsel %vm1125_vm0, %v3276_v24, %v1122_v45  ;;  %1767 = vmatmul.bf16.vlgmr.msrb.gmra.mxu3 %v3556_v52  ;;  %1793 = vmatmul.bf16.vlgmr.msra.gmra.mxu1 %v3556_v52  ;;  %v2849_v24 = vld [vmem:[#allocation5 + $0x538] sm:$0xf0]  ;;  %v2828_v45 = vor.u32 %v3175_v38, %v2825_v39  ;;  %v3222_v39 = vld [vmem:[#allocation7 + $0x68] sm:$0xff] }
 0x183   :  { %v1131_v60 = vsel %vm1128_vm1, %v1130_v54, %v1126_v57  ;;  %1863 = vmatpush.bf16.msrb.mxu3 %v2944_v48  ;;  %1889 = vmatpush.bf16.msra.mxu1 %v2948_v49  ;;  %v2852_v34 = vor.u32 %v3181_v30, %v2849_v24  ;;  %v3133_v48 = vld [vmem:[#allocation5 + $0x3a4] sm:$0xf]  ;;  %v2657_v49 = vld [vmem:[#allocation5 + $0x3b8] sm:$0xf0]  ;;  %v2631_v57 = vld [vmem:[#allocation5 + $0x370] sm:$0xf] }
 0x184   :  { %v1152_v0 = vmul.f32 %v3280_v59, %v1131_v60  ;;  %v2801_v54 = vld [vmem:[#allocation5 + $0x4d8] sm:$0xf0]  ;;  %v2660_v56 = vor.u32 %v3133_v48, %v2657_v49  ;;  %v2633_v59 = vld [vmem:[#allocation5 + $0x388] sm:$0xf0]  ;;  %v2800_v60 = vor.u32 %v3172_v41, %v2799_v53  ;;  %v2632_v9 = vor.u32 %v3130_v42, %v2631_v57  ;;  %v3221_v49 = vld [vmem:[#allocation7 + $0x60] sm:$0xff] }
 0x185   :  { %v2636_v3 = vor.u32 %v3127_v58, %v2633_v59  ;;  %v3219_v58 = vld [vmem:[#allocation7 + $0x50] sm:$0xff]  ;;  %v3212_v59 = vld [vmem:[#allocation7 + $0x18] sm:$0xff] }
 0x186   :  { %v3560_v6 = vpack.c.bf16 %v1152_v0, %v1152_v0  ;;  %v3163_v0 = vld [vmem:[#allocation5 + $0x494] sm:$0xf] }
 0x187   :  { %1864 = vmatpush.bf16.msrb.mxu3 %v2920_v61  ;;  %1890 = vmatpush.bf16.msra.mxu1 %v2924_v62  ;;  %v2804_v61 = vor.u32 %v3169_v2, %v2801_v54  ;;  %v2775_v62 = vld [vmem:[#allocation5 + $0x490] sm:$0xf]  ;;  %v2780_v35 = vor.u32 %v3163_v0, %v2777_v1  ;;  %v3220_v2 = vld [vmem:[#allocation7 + $0x58] sm:$0xff] }
 0x188   :  { %1754 = vmatmul.bf16.vlgmr.msrb.gmra.mxu2 %v3560_v6  ;;  %1780 = vmatmul.bf16.vlgmr.msra.gmra.mxu0 %v3560_v6  ;;  %v2776_v23 = vor.u32 %v3166_v29, %v2775_v62  ;;  %v3218_v29 = vld [vmem:[#allocation7 + $0x48] sm:$0xff]  ;;  %v3211_v0 = vld [vmem:[#allocation7 + $0x10] sm:$0xff] }
 0x189   :  { %1850 = vmatpush.bf16.msrb.mxu2 %v2752_v4  ;;  %1876 = vmatpush.bf16.msra.mxu0 %v2756_v5  ;;  %v2607_v4 = vld [vmem:[#allocation5 + $0x340] sm:$0xf]  ;;  %v3124_v5 = vld [vmem:[#allocation5 + $0x354] sm:$0xf0] }
 0x18b   :  { %1865 = vmatpush.bf16.msrb.mxu3 %v2896_v8  ;;  %1891 = vmatpush.bf16.msra.mxu1 %v2900_v10  ;;  %v2608_v8 = vor.u32 %v3124_v5, %v2607_v4  ;;  %v2612_v10 = vor.u32 %v3121_v63, %v2609_v7  ;;  %v3217_v4 = vld [vmem:[#allocation7 + $0x40] sm:$0xff]  ;;  %v3210_v7 = vld [vmem:[#allocation7 + $0x8] sm:$0xff] }
 0x18d   :  { %1851 = vmatpush.bf16.msrb.mxu2 %v2728_v14  ;;  %1877 = vmatpush.bf16.msra.mxu0 %v2732_v15  ;;  %v2584_v14 = vor.u32 %v3118_v46, %v2583_v11  ;;  %v2588_v15 = vor.u32 %v3115_v13, %v2585_v51 }
 0x18f   :  { %1866 = vmatpush.bf16.msrb.mxu3 %v2872_v19  ;;  %1892 = vmatpush.bf16.msra.mxu1 %v2876_v20  ;;  %v1255_v19 = vperm.slane %v3572_v17, 1 }
 0x191   :  { %1852 = vmatpush.bf16.msrb.mxu2 %v2704_v25  ;;  %1878 = vmatpush.bf16.msra.mxu0 %v2708_v26 }
 0x192   :  { %1819 = vmatmul.bf16.vlgmr.msra.gmra.mxu3 %v3556_v52  ;;  %1845 = vmatmul.bf16.vlgmr.msrb.gmra.mxu1 %v3556_v52 }
 0x193   :  { %1867 = vmatpush.bf16.msrb.mxu3 %v2848_v33  ;;  %1893 = vmatpush.bf16.msra.mxu1 %v2852_v34  ;;  %v3223_v34 = vld [vmem:[#allocation7 + $0x70] sm:$0xff] }
 0x195   :  { %1853 = vmatpush.bf16.msrb.mxu2 %v2680_v40  ;;  %1879 = vmatpush.bf16.msra.mxu0 %v2684_v43 }
 0x197   :  { %1868 = vmatpush.bf16.msrb.mxu3 %v2824_v50  ;;  %1894 = vmatpush.bf16.msra.mxu1 %v2828_v45  ;;  %v3214_v45 = vld [vmem:[#allocation7 + $0x28] sm:$0xff] }
 0x198   :  { %1806 = vmatmul.bf16.vlgmr.msra.gmra.mxu2 %v3560_v6  ;;  %1832 = vmatmul.bf16.vlgmr.msrb.gmra.mxu0 %v3560_v6 }
 0x199   :  { %1854 = vmatpush.bf16.msrb.mxu2 %v2656_v55  ;;  %1880 = vmatpush.bf16.msra.mxu0 %v2660_v56  ;;  %v3213_v56 = vld [vmem:[#allocation7 + $0x20] sm:$0xff] }
 0x19b   :  { %1869 = vmatpush.bf16.msrb.mxu3 %v2800_v60  ;;  %1895 = vmatpush.bf16.msra.mxu1 %v2804_v61  ;;  %v1259_v61 = vperm.slane %v3572_v17, 5 }
 0x19d   :  { %1855 = vmatpush.bf16.msrb.mxu2 %v2632_v9  ;;  %1881 = vmatpush.bf16.msra.mxu0 %v2636_v3 }
 0x19f   :  { %1870 = vmatpush.bf16.msrb.mxu3 %v2776_v23  ;;  %1896 = vmatpush.bf16.msra.mxu1 %v2780_v35  ;;  %v1257_v35 = vperm.slane %v3572_v17, 3 }
 0x1a1   :  { %1856 = vmatpush.bf16.msrb.mxu2 %v2608_v8  ;;  %1882 = vmatpush.bf16.msra.mxu0 %v2612_v10  ;;  %v1258_v10 = vperm.slane %v3572_v17, 4 }
 0x1a2   :  { %1871 = vmatmul.bf16.vlgmr.msrb.gmra.mxu3 %v3556_v52  ;;  %1897 = vmatmul.bf16.vlgmr.msra.gmra.mxu1 %v3556_v52  ;;  %v1254_v52 = vperm.slane %v3572_v17, 0 }
 0x1a3   :  { %2129 = vmatpush.bf16.msra.mxu3 %v3224_v27 }
 0x1a5   :  { %1857 = vmatpush.bf16.msrb.mxu2 %v2584_v14  ;;  %1883 = vmatpush.bf16.msra.mxu0 %v2588_v15  ;;  %v3209_v14 = vld [vmem:[#allocation7] sm:$0xff] }
 0x1a7   :  { %2130 = vmatpush.bf16.msra.mxu3 %v3223_v34 }
 0x1a8   :  { %1858 = vmatmul.bf16.vlgmr.msrb.gmra.mxu2 %v3560_v6  ;;  %1884 = vmatmul.bf16.vlgmr.msra.gmra.mxu0 %v3560_v6 }
 0x1a9   :  { %2116 = vmatpush.bf16.msra.mxu2 %v3216_v37 }
 0x1ab   :  { %2131 = vmatpush.bf16.msra.mxu3 %v3222_v39 }
 0x1ad   :  { %2117 = vmatpush.bf16.msra.mxu2 %v3215_v47 }
 0x1af   :  { %2132 = vmatpush.bf16.msra.mxu3 %v3221_v49 }
 0x1b1   :  { %2118 = vmatpush.bf16.msra.mxu2 %v3214_v45 }
 0x1b3   :  { %2133 = vmatpush.bf16.msra.mxu3 %v3220_v2 }
 0x1b5   :  { %2119 = vmatpush.bf16.msra.mxu2 %v3213_v56 }
 0x1b7   :  { %2134 = vmatpush.bf16.msra.mxu3 %v3219_v58 }
 0x1b9   :  { %2120 = vmatpush.bf16.msra.mxu2 %v3212_v59 }
 0x1bb   :  { %2135 = vmatpush.bf16.msra.mxu3 %v3218_v29 }
 0x1bd   :  { %2121 = vmatpush.bf16.msra.mxu2 %v3211_v0 }
 0x1bf   :  { %2136 = vmatpush.bf16.msra.mxu3 %v3217_v4 }
 0x1c1   :  { %2122 = vmatpush.bf16.msra.mxu2 %v3210_v7 }
 0x1c5   :  { %2123 = vmatpush.bf16.msra.mxu2 %v3209_v14 }
 0x1ff   :  { %v1794_v18 = vpop.f32.mrf.mxu1 }
 0x205   :  { %v1768_v20 = vpop.f32.mrf.mxu3  ;;  %v1781_v21 = vpop.f32.mrf.mxu0 }
 0x206   :  { %v1782_v22 = vadd.f32 %v1781_v21, %v1255_v19 }
 0x207   :  { %v1796_v30 = vpop.f32.mrf.mxu1 }
 0x208   :  { %v1795_v24 = vadd.f32 %v1794_v18, %v1782_v22 }
 0x20a   :  { %v2950_v25 = vmul.f32 -1.442695, %v1795_v24 }
 0x20b   :  { %v1755_v26 = vpop.f32.mrf.mxu2 }
 0x20c   :  { %v1756_v28 = vadd.f32 %v1755_v26, %v1254_v52  ;;  %3281 = vpow2.f32 %v2950_v25 }
 0x20d   :  { %v1770_v12 = vpop.f32.mrf.mxu3  ;;  %v1783_v6 = vpop.f32.mrf.mxu0 }
 0x20e   :  { %v1769_v32 = vadd.f32 %v1768_v20, %v1756_v28  ;;  %v1256_v20 = vperm.slane %v3572_v17, 2 }
 0x20f   :  { %v3576_v33 = vpop.f32.mrf.mxu1 }
 0x210   :  { %v2949_v36 = vmul.f32 -1.442695, %v1769_v32 }
 0x212   :  { %v3282_v40 = vpop.eup %3281  ;;  %3283 = vpow2.f32 %v2949_v36 }
 0x213   :  { %v1757_v38 = vpop.f32.mrf.mxu2  ;;  %v3580_v50 = vadd.f32 1.0, %v3282_v40 }
 0x215   :  { %v3578_v43 = vpop.f32.mrf.mxu3  ;;  %v1833_v44 = vpop.f32.mrf.mxu0  ;;  %3285 = vrcp.f32 %v3580_v50  ;;  %v1936_v26 = vand.u32 2147483648, %v3580_v50  ;;  %vm1930_vm3 = vweird.f32 %v3580_v50  ;;  %v1934_v28 = vand.u32 2147483647, %v3580_v50 }
 0x216   :  { %v1834_v15 = vadd.f32 %v1833_v44, %v1257_v35 }
 0x217   :  { %v1848_v48 = vpop.f32.mrf.mxu1  ;;  %vm1935_vm5 = vcmp.eq.f32.partialorder %v1934_v28, 8.507059e+37 }
 0x218   :  { %v3284_v53 = vpop.eup %3283  ;;  %v1847_v30 = vadd.f32 %v3576_v33, %v1834_v15  ;;  %v1937_v33 = vor.u32 1.1754944e-38, %v1936_v26 }
 0x219   :  { %v3583_v57 = vadd.f32 1.0, %v3284_v53 }
 0x21b   :  { %v1807_v41 = vpop.f32.mrf.mxu2  ;;  %v3286_v60 = vpop.eup %3285  ;;  %3287 = vrcp.f32 %v3583_v57  ;;  %v1921_v39 = vand.u32 2147483648, %v3583_v57  ;;  %vm1915_vm7 = vweird.f32 %v3583_v57  ;;  %v1919_v40 = vand.u32 2147483647, %v3583_v57 }
 0x21c   :  { %v1926_v1 = vmul.f32 %v3286_v60, %v3580_v50  ;;  %vm1931_vm2 = vweird.f32 %v3286_v60  ;;  %v1808_v27 = vadd.f32 %v1807_v41, %v1256_v20 }
 0x21d   :  { %v1822_v54 = vpop.f32.mrf.mxu3  ;;  %v1835_v55 = vpop.f32.mrf.mxu0  ;;  %vm1932_vm4 = vmor %vm1930_vm3, %vm1931_vm2  ;;  %vm1920_vm9 = vcmp.eq.f32.partialorder %v1919_v40, 8.507059e+37 }
 0x21e   :  { %v1927_v11 = vsub.f32 1.0, %v1926_v1  ;;  %v1821_v34 = vadd.f32 %v3578_v43, %v1808_v27  ;;  %v1922_v43 = vor.u32 1.1754944e-38, %v1921_v39 }
 0x21f   :  { %v1898_v42 = vpop.f32.mrf.mxu1 }
 0x220   :  { %v1928_v16 = vmul.f32 %v3286_v60, %v1927_v11 }
 0x221   :  { %v3288_v23 = vpop.eup %3287 }
 0x222   :  { %v1911_v13 = vmul.f32 %v3288_v23, %v3583_v57  ;;  %v1929_v52 = vadd.f32 %v3286_v60, %v1928_v16  ;;  %vm1916_vm6 = vweird.f32 %v3288_v23 }
 0x223   :  { %v1809_v62 = vpop.f32.mrf.mxu2  ;;  %vm1917_vm8 = vmor %vm1915_vm7, %vm1916_vm6 }
 0x224   :  { %v1912_v22 = vsub.f32 1.0, %v1911_v13  ;;  %v1933_v32 = vsel %vm1932_vm4, %v3286_v60, %v1929_v52  ;;  %v82_v13 = vld [vmem:[#allocation2 + $0x7] ss:$0 sm:$0xff] }
 0x225   :  { %v1872_v9 = vpop.f32.mrf.mxu3  ;;  %v1885_v3 = vpop.f32.mrf.mxu0  ;;  %v1938_v38 = vsel %vm1935_vm5, %v1937_v33, %v1933_v32 }
 0x226   :  { %v1886_v5 = vadd.f32 %v1885_v3, %v1259_v61  ;;  %v1913_v12 = vmul.f32 %v3288_v23, %v1912_v22 }
 0x227   :  { %v1900_v63 = vpop.f32.mrf.mxu1 }
 0x228   :  { %v1899_v8 = vadd.f32 %v1898_v42, %v1886_v5  ;;  %v1914_v36 = vadd.f32 %v3288_v23, %v1913_v12 }
 0x22a   :  { %v2952_v46 = vmul.f32 -1.442695, %v1899_v8  ;;  %v1918_v50 = vsel %vm1917_vm8, %v3288_v23, %v1914_v36 }
 0x22b   :  { %v1859_v51 = vpop.f32.mrf.mxu2  ;;  %v1923_v53 = vsel %vm1920_vm9, %v1922_v43, %v1918_v50 }
 0x22c   :  { %3289 = vpow2.f32 %v2952_v46  ;;  %v1860_v31 = vadd.f32 %v1859_v51, %v1258_v10 }
 0x22d   :  { %v1874_v18 = vpop.f32.mrf.mxu3  ;;  %v1887_v19 = vpop.f32.mrf.mxu0 }
 0x22e   :  { %v1873_v21 = vadd.f32 %v1872_v9, %v1860_v31 }
 0x230   :  { %v2951_v24 = vmul.f32 -1.442695, %v1873_v21 }
 0x232   :  { %v3290_v25 = vpop.eup %3289  ;;  %3291 = vpow2.f32 %v2951_v24 }
 0x233   :  { %v1949_v6 = vadd.f32 1.0, %v3290_v25  ;;  %v1861_v17 = vpop.f32.mrf.mxu2  ;;  %3293 = vtanh.f32 %v1847_v30 }
 0x235   :  { %3295 = vrcp.f32 %v1949_v6  ;;  %v1976_v2 = vand.u32 2147483648, %v1949_v6  ;;  %v1974_v56 = vand.u32 2147483647, %v1949_v6  ;;  %vm1970_vm11 = vweird.f32 %v1949_v6 }
 0x236   :  { %3297 = vtanh.f32 %v1821_v34 }
 0x237   :  { %v1977_v60 = vor.u32 1.1754944e-38, %v1976_v2  ;;  %vm1975_vm13 = vcmp.eq.f32.partialorder %v1974_v56, 8.507059e+37 }
 0x238   :  { %v3292_v37 = vpop.eup %3291 }
 0x239   :  { %v1948_v44 = vadd.f32 1.0, %v3292_v37  ;;  %v3294_v47 = vpop.eup %3293 }
 0x23a   :  { %v1981_v49 = vmul.f32 %v3294_v47, %v1938_v38 }
 0x23b   :  { %v3296_v48 = vpop.eup %3295  ;;  %3299 = vrcp.f32 %v1948_v44  ;;  %v1961_v1 = vand.u32 2147483648, %v1948_v44  ;;  %v1959_v4 = vand.u32 2147483647, %v1948_v44  ;;  %vm1955_vm15 = vweird.f32 %v1948_v44 }
 0x23c   :  { %v1966_v45 = vmul.f32 %v3296_v48, %v1949_v6  ;;  %3301 = vtanh.f32 %v1981_v49  ;;  %v3298_v54 = vpop.eup %3297  ;;  %vm1971_vm10 = vweird.f32 %v3296_v48 }
 0x23d   :  { %v1980_v42 = vmul.f32 %v3298_v54, %v1923_v53  ;;  %vm1972_vm12 = vmor %vm1970_vm11, %vm1971_vm10  ;;  %v1962_v7 = vor.u32 1.1754944e-38, %v1961_v1  ;;  %vm1960_vm1 = vcmp.eq.f32.partialorder %v1959_v4, 8.507059e+37 }
 0x23e   :  { %v1967_v41 = vsub.f32 1.0, %v1966_v45 }
 0x23f   :  { %3303 = vtanh.f32 %v1980_v42 }
 0x240   :  { %v1968_v55 = vmul.f32 %v3296_v48, %v1967_v41 }
 0x241   :  { %v3300_v57 = vpop.eup %3299 }
 0x242   :  { %v1951_v58 = vmul.f32 %v3300_v57, %v1948_v44  ;;  %v1969_v59 = vadd.f32 %v3296_v48, %v1968_v55  ;;  %v3302_v29 = vpop.eup %3301  ;;  %vm1956_vm14 = vweird.f32 %v3300_v57 }
 0x243   :  { %vm1957_vm0 = vmor %vm1955_vm15, %vm1956_vm14 }
 0x244   :  { %v1952_v61 = vsub.f32 1.0, %v1951_v58  ;;  %v1973_v62 = vsel %vm1972_vm12, %v3296_v48, %v1969_v59 }
 0x245   :  { %v1978_v0 = vsel %vm1975_vm13, %v1977_v60, %v1973_v62  ;;  %v3304_v35 = vpop.eup %3303 }
 0x246   :  { %v1985_v9 = vmul.f32 %v3302_v29, %v1978_v0  ;;  %v1953_v3 = vmul.f32 %v3300_v57, %v1952_v61 }
 0x248   :  { %v1987_v5 = vpack.c.bf16 %v1985_v9, %v1985_v9  ;;  %v1954_v63 = vadd.f32 %v3300_v57, %v1953_v3 }
 0x24a   :  { %2137 = vmatmul.bf16.vlgmr.msra.gmra.mxu3 %v1987_v5  ;;  %v1958_v23 = vsel %vm1957_vm0, %v3300_v57, %v1954_v63 }
 0x24b   :  { %v1963_v8 = vsel %vm1960_vm1, %v1962_v7, %v1958_v23 }
 0x24c   :  { %v1984_v10 = vmul.f32 %v3304_v35, %v1963_v8 }
 0x24e   :  { %v1986_v11 = vpack.c.bf16 %v1984_v10, %v1984_v10 }
 0x250   :  { %2124 = vmatmul.bf16.vlgmr.msra.gmra.mxu2 %v1986_v11 }
 0x2cd   :  { %v2138_v46 = vpop.f32.mrf.mxu3 }
 0x2d3   :  { %v2125_v51 = vpop.f32.mrf.mxu2 }
 0x2d4   :  { %v2126_v14 = vadd.f32 %v2125_v51, %v82_v13 }
 0x2d5   :  { %v2140_v15 = vpop.f32.mrf.mxu3 }
 0x2d6   :  { %v2139_v31 = vadd.f32 %v2138_v46, %v2126_v14 }
 0x2d8   :  { %2142 = vst [vmem:[#allocation8] sm:$0xff] %v2139_v31 }
 0x2d9   :  { %2153 = dma.vmem_to_hbm [thread:$0]  %s2149_s3, 128, %s2151_s10, [#allocation4]  }
 0x2db   :  { %v2127_v16 = vpop.f32.mrf.mxu2 }
 0x2dc   :  { %3405 = dma.done.wait [#allocation4], 128  }
 0x2dd   :  { %3406 = vsyncadd [#allocation4], 4294967168 }
 0x2de   :  { %2158 = vsyncpa [#allocation3], 1 }
 0x2df   :  { %2159 = vsyncpa [#allocation6], 1 }
 0x2e0   :  { %2160 = vsyncpa [#allocation4], 1 }

</bundles_post_ra>
